<compile_context>
chip_gen: v6e
topology: v6e:2x2x1
jax: 0.10.0
libtpu: 0.0.40
codegen_flags: <defaults>
</compile_context>

<pallas_src>
import math
import jax
import jax.numpy as jnp
from jax import lax
from jax.experimental import pallas as pl
from jax.experimental.pallas import tpu as pltpu

# Small, self-consistent config (Config.* in the original module).
S, B = 8, 2              # sequence length, batch
E, H = 32, 4             # embedding dims, attention heads
FF = 64                  # hidden (feed-forward) dims
L = 2                    # number of encoder layers
V = 16                   # vocab size
DH = E // H
BS = B * S               # fused row axis, s-major: row = s*B + b
LANE = 128
LN_EPS = 1e-5
NEG_INF = -1e30          # stands in for -inf in the causal mask
SQRT_E = math.sqrt(E)
SCALE = 1.0 / math.sqrt(DH)
LOG2_B = int(math.log2(B))
LOG2_BS = int(math.log2(BS))
LOG2_DH = int(math.log2(DH))

# ----------------------- slab layout (static offsets) ---------------------- #
# weight slab (W_ROWS, 128): all matmul weights, pre-transposed to x @ W form.
EMB_OFF = 0                          # embedding table     (V, E)   (pre-scaled)
LIN_OFF = EMB_OFF + V                # final linear W^T    (E, V)   (cols >= V zero)
LAYER_W_OFF = LIN_OFF + E            # per-layer block of 160 rows
WQKV_OFF = 0                         # (E, 3E)   (Q cols pre-scaled by 1/sqrt(DH))
WO_OFF = WQKV_OFF + E                # (E, E)
W1_OFF = WO_OFF + E                  # (E, FF)
W2_OFF = W1_OFF + E                  # (FF, E)
LAYER_W_ROWS = W2_OFF + FF           # 160
W_ROWS = LAYER_W_OFF + L * LAYER_W_ROWS          # 368 (multiple of 8)

# vector slab (V_ROWS, 128): positional encoding + every bias / LN gain.
PE_OFF = 0                           # (BS, E), row s*B+b = pe[s]
LINB_ROW = PE_OFF + BS               # final linear bias (V used)
LAYER_V_OFF = LINB_ROW + 1           # per-layer: 8 rows
# within a layer: 0 bqkv(3E) 1 bo(E) 2 ln1g(E) 3 ln1b(E) 4 b1(FF) 5 b2(E) 6 ln2g(E) 7 ln2b(E)
LAYER_V_ROWS = 8
V_ROWS = ((LAYER_V_OFF + L * LAYER_V_ROWS + 7) // 8) * 8   # 40


def _layer_norm(x, g, b):
    mu = jnp.mean(x, axis=-1, keepdims=True)
    var = jnp.mean((x - mu) ** 2, axis=-1, keepdims=True)
    return (x - mu) * lax.rsqrt(var + LN_EPS) * g + b


# ------------------------------- kernel ------------------------------------ #

def transformer_kernel(ids_ref, w_ref, v_ref, o_ref):
    f32 = jnp.float32

    # --- embedding gather as one-hot matmul (sqrt(E) folded into the table) --
    ids = ids_ref[...]                                            # (BS, 1) int32
    onehot = (ids == lax.broadcasted_iota(jnp.int32, (BS, V), 1)).astype(f32)
    emb_tbl = w_ref[EMB_OFF:EMB_OFF + V, 0:E]                     # (V, E)
    pe = v_ref[PE_OFF:PE_OFF + BS, 0:E]                           # (BS, E)
    x = jnp.dot(onehot, emb_tbl, preferred_element_type=f32) + pe

    # --- packing helpers, built once with shift/and only (no div/mod) -------
    # additive mask replicated per head segment: (BS, H*BS)
    r = lax.broadcasted_iota(jnp.int32, (BS, H * BS), 0)          # query row = s_q*B+b_q
    c = lax.broadcasted_iota(jnp.int32, (BS, H * BS), 1)          # h*BS + key row
    j = c & (BS - 1)                                              # key row within head
    keep = ((r & (B - 1)) == (j & (B - 1))) & ((j >> LOG2_B) <= (r >> LOG2_B))
    mask_all = jnp.where(keep, 0.0, NEG_INF).astype(f32)          # (BS, H*BS)

    # block-diagonal selector: row block h of the stacked K/V keeps lanes of head h
    rr = lax.broadcasted_iota(jnp.int32, (H * BS, E), 0)
    cc = lax.broadcasted_iota(jnp.int32, (H * BS, E), 1)
    vmask = ((rr >> LOG2_BS) == (cc >> LOG2_DH)).astype(f32)      # (H*BS, E)

    # per-head-segment summation matrix for the softmax denominator
    c0 = lax.broadcasted_iota(jnp.int32, (H * BS, H * BS), 0)
    c1 = lax.broadcasted_iota(jnp.int32, (H * BS, H * BS), 1)
    seg_ones = ((c0 >> LOG2_BS) == (c1 >> LOG2_BS)).astype(f32)   # (H*BS, H*BS)

    # --- encoder layers (post-norm, ReLU FF, dropout = identity) ------------
    for l in range(L):
        wb = LAYER_W_OFF + l * LAYER_W_ROWS
        vb = LAYER_V_OFF + l * LAYER_V_ROWS
        wqkv = w_ref[wb + WQKV_OFF: wb + WQKV_OFF + E, 0:3 * E]   # (E, 3E)
        wo = w_ref[wb + WO_OFF: wb + WO_OFF + E, 0:E]             # (E, E)
        w1 = w_ref[wb + W1_OFF: wb + W1_OFF + E, 0:FF]            # (E, FF)
        w2 = w_ref[wb + W2_OFF: wb + W2_OFF + FF, 0:E]            # (FF, E)
        bqkv = v_ref[vb + 0: vb + 1, 0:3 * E]
        bo = v_ref[vb + 1: vb + 2, 0:E]
        ln1g = v_ref[vb + 2: vb + 3, 0:E]
        ln1b = v_ref[vb + 3: vb + 4, 0:E]
        b1 = v_ref[vb + 4: vb + 5, 0:FF]
        b2 = v_ref[vb + 5: vb + 6, 0:E]
        ln2g = v_ref[vb + 6: vb + 7, 0:E]
        ln2b = v_ref[vb + 7: vb + 8, 0:E]

        # fused QKV projection (Q columns already pre-scaled by 1/sqrt(DH))
        qkv = jnp.dot(x, wqkv, preferred_element_type=f32) + bqkv   # (BS, 3E)
        q = qkv[:, 0:E]                                             # (BS, E)
        k = qkv[:, E:2 * E]                                         # (BS, E)
        vv = qkv[:, 2 * E:3 * E]                                    # (BS, E)

        # packed multi-head attention: all H heads in 4 matmuls, no transposes
        kbd = jnp.concatenate([k] * H, axis=0) * vmask              # (H*BS, E)
        vbd = jnp.concatenate([vv] * H, axis=0) * vmask             # (H*BS, E)
        # scores[:, h*BS + j] = q_h . k_h[j]  (contraction over DH, NT form)
        s = lax.dot_general(q, kbd, (((1,), (1,)), ((), ())),
                            preferred_element_type=f32) + mask_all  # (BS, H*BS)
        s = s - jnp.max(s, axis=-1, keepdims=True)                  # global row max >= per-head max
        p = jnp.exp(s)
        denom = jnp.dot(p, seg_ones, preferred_element_type=f32)    # per-head-segment sums
        p = p / denom                                               # exact softmax
        hv = jnp.dot(p, vbd, preferred_element_type=f32)            # (BS, E) = concat(head outputs)
        attn = jnp.dot(hv, wo, preferred_element_type=f32) + bo

        x = _layer_norm(x + attn, ln1g, ln1b)

        hdn = jnp.maximum(
            jnp.dot(x, w1, preferred_element_type=f32) + b1, 0.0)
        ffo = jnp.dot(hdn, w2, preferred_element_type=f32) + b2
        x = _layer_norm(x + ffo, ln2g, ln2b)

    # --- final linear: weights padded to 128 lanes -> lane-dense full store --
    lin_w = w_ref[LIN_OFF:LIN_OFF + E, :]            # (E, 128), cols >= V are zero
    lin_b = v_ref[LINB_ROW:LINB_ROW + 1, :]          # (1, 128)
    o_ref[...] = jnp.dot(x, lin_w, preferred_element_type=f32) + lin_b


# ------------------------------ wrappers ------------------------------------ #

def transformer_forward(src, wslab, vslab):
    # src: (S, B) int32 token ids
    ids = src.reshape(BS, 1).astype(jnp.int32)       # s-major rows: row = s*B + b
    out = pl.pallas_call(
        transformer_kernel,
        out_shape=jax.ShapeDtypeStruct((BS, LANE), jnp.float32),
        grid=(1,),
        in_specs=[
            pl.BlockSpec((BS, 1), lambda i: (0, 0)),
            pl.BlockSpec((W_ROWS, LANE), lambda i: (0, 0)),
            pl.BlockSpec((V_ROWS, LANE), lambda i: (0, 0)),
        ],
        out_specs=pl.BlockSpec((BS, LANE), lambda i: (0, 0)),
        cost_estimate=pl.CostEstimate(flops=1_200_000, transcendentals=2112,
                                      bytes_accessed=220_000),
    )(ids, wslab, vslab)
    return out[:, :V].reshape(S, B, V)               # (S, B, V) like PyTorch


transformer_forward_jit = jax.jit(transformer_forward)


# ------------------------------ parameters ---------------------------------- #

def make_params(key):
    ks = jax.random.split(key, 2 + 4 * L)
    params = {}
    params["emb_w"] = jax.random.uniform(ks[0], (V, E), jnp.float32, -0.1, 0.1)
    # final linear: PyTorch stores (out, in); kernel uses transposed (E, V).
    lin_w = jax.random.uniform(ks[1], (V, E), jnp.float32, -0.1, 0.1)
    params["lin_w_t"] = lin_w.T
    params["lin_b"] = jnp.zeros((1, V), jnp.float32)

    layers = []
    for l in range(L):
        k0, k1, k2, k3 = ks[2 + 4 * l: 2 + 4 * (l + 1)]
        wqkv = 0.05 * jax.random.normal(k0, (3 * E, E), jnp.float32)   # in_proj_weight
        bqkv = jnp.zeros((1, 3 * E), jnp.float32)
        wo = 0.05 * jax.random.normal(k1, (E, E), jnp.float32)         # out_proj.weight
        bo = jnp.zeros((1, E), jnp.float32)
        ln1g = jnp.ones((1, E), jnp.float32)
        ln1b = jnp.zeros((1, E), jnp.float32)
        w1 = 0.05 * jax.random.normal(k2, (FF, E), jnp.float32)        # linear1.weight
        b1 = jnp.zeros((1, FF), jnp.float32)
        w2 = 0.05 * jax.random.normal(k3, (E, FF), jnp.float32)        # linear2.weight
        b2 = jnp.zeros((1, E), jnp.float32)
        ln2g = jnp.ones((1, E), jnp.float32)
        ln2b = jnp.zeros((1, E), jnp.float32)
        # pre-transpose matmul weights so kernels compute x @ W directly
        layers.append((wqkv.T, bqkv, wo.T, bo, ln1g, ln1b,
                       w1.T, b1, w2.T, b2, ln2g, ln2b))
    params["layers"] = layers
    return params


def make_pos_encoding():
    position = jnp.arange(S, dtype=jnp.float32)[:, None]
    div_term = jnp.exp(jnp.arange(0, E, 2, dtype=jnp.float32) * (-math.log(10000.0) / E))
    pe = jnp.zeros((S, 1, E), jnp.float32)
    pe = pe.at[:, 0, 0::2].set(jnp.sin(position * div_term))
    pe = pe.at[:, 0, 1::2].set(jnp.cos(position * div_term))
    return pe


def make_causal_mask():
    i = jnp.arange(S)[:, None]
    j = jnp.arange(S)[None, :]
    return jnp.where(j > i, NEG_INF, 0.0).astype(jnp.float32)


def pack_params(params, pe):
    """Pack weights into one (W_ROWS,128) slab + one (V_ROWS,128) slab.

    Pack-time constant folding: sqrt(E) into the embedding table, 1/sqrt(DH)
    into the Q columns of wqkv and the Q segment of bqkv.
    """
    qscale = jnp.concatenate([jnp.full((E,), SCALE, jnp.float32),
                              jnp.ones((2 * E,), jnp.float32)])[None, :]   # (1, 3E)

    wslab = jnp.zeros((W_ROWS, LANE), jnp.float32)
    wslab = wslab.at[EMB_OFF:EMB_OFF + V, 0:E].set(params["emb_w"] * SQRT_E)
    wslab = wslab.at[LIN_OFF:LIN_OFF + E, 0:V].set(params["lin_w_t"])

    vslab = jnp.zeros((V_ROWS, LANE), jnp.float32)
    pe_bs = jnp.repeat(pe[:, 0, :], B, axis=0)       # (BS, E), row s*B+b = pe[s]
    vslab = vslab.at[PE_OFF:PE_OFF + BS, 0:E].set(pe_bs)
    vslab = vslab.at[LINB_ROW, 0:V].set(params["lin_b"][0])

    for l, (wqkv, bqkv, wo, bo, ln1g, ln1b, w1, b1, w2, b2, ln2g, ln2b) \
            in enumerate(params["layers"]):
        wb = LAYER_W_OFF + l * LAYER_W_ROWS
        wslab = wslab.at[wb + WQKV_OFF:wb + WQKV_OFF + E, 0:3 * E].set(wqkv * qscale)
        wslab = wslab.at[wb + WO_OFF:wb + WO_OFF + E, 0:E].set(wo)
        wslab = wslab.at[wb + W1_OFF:wb + W1_OFF + E, 0:FF].set(w1)
        wslab = wslab.at[wb + W2_OFF:wb + W2_OFF + FF, 0:E].set(w2)

        vb = LAYER_V_OFF + l * LAYER_V_ROWS
        vslab = vslab.at[vb + 0, 0:3 * E].set((bqkv * qscale)[0])
        vslab = vslab.at[vb + 1, 0:E].set(bo[0])
        vslab = vslab.at[vb + 2, 0:E].set(ln1g[0])
        vslab = vslab.at[vb + 3, 0:E].set(ln1b[0])
        vslab = vslab.at[vb + 4, 0:FF].set(b1[0])
        vslab = vslab.at[vb + 5, 0:E].set(b2[0])
        vslab = vslab.at[vb + 6, 0:E].set(ln2g[0])
        vslab = vslab.at[vb + 7, 0:E].set(ln2b[0])
    return wslab, vslab


# --------------------------- pure-JAX reference ------------------------------ #

def reference_forward(src, params, pe, mask):
    x = params["emb_w"][src] * math.sqrt(E) + pe     # (S, B, E)
    x = jnp.transpose(x, (1, 0, 2))                  # (B, S, E)
    for (wqkv, bqkv, wo, bo, ln1g, ln1b, w1, b1, w2, b2, ln2g, ln2b) in params["layers"]:
        qkv = x @ wqkv + bqkv
        q, k, v = qkv[..., :E], qkv[..., E:2 * E], qkv[..., 2 * E:]
        outs = []
        for h in range(H):
            qh = q[..., h * DH:(h + 1) * DH]
            kh = k[..., h * DH:(h + 1) * DH]
            vh = v[..., h * DH:(h + 1) * DH]
            s = jnp.einsum("bqd,bkd->bqk", qh, kh) / math.sqrt(DH) + mask
            p = jax.nn.softmax(s, axis=-1)
            outs.append(jnp.einsum("bqk,bkd->bqd", p, vh))
        attn = jnp.concatenate(outs, axis=-1) @ wo + bo
        x = _layer_norm(x + attn, ln1g, ln1b)
        ff = jnp.maximum(x @ w1 + b1, 0.0) @ w2 + b2
        x = _layer_norm(x + ff, ln2g, ln2b)
    out = x @ params["lin_w_t"] + params["lin_b"]
    return jnp.transpose(out, (1, 0, 2))             # (S, B, V)


# ---------------------------------- main ------------------------------------- #

if __name__ == "__main__":
    key = jax.random.PRNGKey(0)
    kp, kt = jax.random.split(key)
    params = make_params(kp)
    pe = make_pos_encoding()
    mask = make_causal_mask()
    src = jax.random.randint(kt, (S, B), 0, V, dtype=jnp.int32)

    wslab, vslab = pack_params(params, pe)

    out = transformer_forward_jit(src, wslab, vslab)
    out = jax.block_until_ready(out)

    ref = reference_forward(src, params, pe, mask)
    assert out.shape == (S, B, V), out.shape
    assert jnp.allclose(out, ref, atol=2e-3, rtol=2e-3), \
        float(jnp.max(jnp.abs(out - ref)))
    print("KERNEL_OK")
</pallas_src>

<mosaic_0001>
module attributes {stable_mosaic.version = 11 : i64} {
  func.func @transformer_kernel(%arg0: i32, %arg1: memref<16x1xi32, #tpu.memory_space<vmem>>, %arg2: memref<368x128xf32, #tpu.memory_space<vmem>>, %arg3: memref<40x128xf32, #tpu.memory_space<vmem>>, %arg4: memref<16x128xf32, #tpu.memory_space<vmem>>) attributes {dimension_semantics = [#tpu.dimension_semantics<arbitrary>], iteration_bounds = array<i64: 1>, scalar_prefetch = 0 : i64, scratch_operands = 0 : i64, tpu.core_type = #tpu.core_type<tc>, window_params = [{pipeline_mode = #tpu.pipeline_mode<synchronous>, transform_indices = @transform_0, window_bounds = array<i64: 16, 1>}, {pipeline_mode = #tpu.pipeline_mode<synchronous>, transform_indices = @transform_1, window_bounds = array<i64: 368, 128>}, {pipeline_mode = #tpu.pipeline_mode<synchronous>, transform_indices = @transform_2, window_bounds = array<i64: 40, 128>}, {pipeline_mode = #tpu.pipeline_mode<synchronous>, transform_indices = @transform_3, window_bounds = array<i64: 16, 128>}]} {
    %c0 = arith.constant 0 : index
    %c0_0 = arith.constant 0 : index
    %0 = vector.load %arg1[%c0, %c0_0] : memref<16x1xi32, #tpu.memory_space<vmem>>, vector<16x1xi32>
    %1 = tpu.iota {dimensions = array<i32: 1>} : vector<16x16xi32>
    %2 = vector.broadcast %0 : vector<16x1xi32> to vector<16x16xi32>
    %3 = arith.cmpi eq, %2, %1 : vector<16x16xi32>
    %4 = arith.extui %3 : vector<16x16xi1> to vector<16x16xi32>
    %5 = arith.sitofp %4 : vector<16x16xi32> to vector<16x16xf32>
    %c0_1 = arith.constant 0 : index
    %c0_2 = arith.constant 0 : index
    %6 = vector.load %arg2[%c0_1, %c0_2] : memref<368x128xf32, #tpu.memory_space<vmem>>, vector<16x32xf32>
    %c0_3 = arith.constant 0 : index
    %c0_4 = arith.constant 0 : index
    %7 = vector.load %arg3[%c0_3, %c0_4] : memref<40x128xf32, #tpu.memory_space<vmem>>, vector<16x32xf32>
    %cst = arith.constant dense<0.000000e+00> : vector<16x32xf32>
    %8 = tpu.matmul %5, %6, %cst {dimension_numbers = #tpu.dot_dimension_numbers<[1], [0], [0], [1], [0, 0, 1, 1], [], []>} : vector<16x16xf32>, vector<16x32xf32>, vector<16x32xf32> -> vector<16x32xf32>
    %9 = arith.addf %8, %7 : vector<16x32xf32>
    %10 = tpu.iota {dimensions = array<i32: 0>} : vector<16x64xi32>
    %11 = tpu.iota {dimensions = array<i32: 1>} : vector<16x64xi32>
    %c15_i32 = arith.constant 15 : i32
    %12 = vector.broadcast %c15_i32 : i32 to vector<16x64xi32>
    %13 = arith.andi %11, %12 : vector<16x64xi32>
    %c1_i32 = arith.constant 1 : i32
    %14 = vector.broadcast %c1_i32 : i32 to vector<16x64xi32>
    %15 = arith.andi %10, %14 : vector<16x64xi32>
    %c1_i32_5 = arith.constant 1 : i32
    %16 = vector.broadcast %c1_i32_5 : i32 to vector<16x64xi32>
    %17 = arith.andi %13, %16 : vector<16x64xi32>
    %18 = arith.cmpi eq, %15, %17 : vector<16x64xi32>
    %c1_i32_6 = arith.constant 1 : i32
    %19 = vector.broadcast %c1_i32_6 : i32 to vector<16x64xi32>
    %20 = arith.shrsi %13, %19 : vector<16x64xi32>
    %c1_i32_7 = arith.constant 1 : i32
    %21 = vector.broadcast %c1_i32_7 : i32 to vector<16x64xi32>
    %22 = arith.shrsi %10, %21 : vector<16x64xi32>
    %23 = arith.cmpi sle, %20, %22 : vector<16x64xi32>
    %24 = arith.andi %18, %23 : vector<16x64xi1>
    %cst_8 = arith.constant 0.000000e+00 : f32
    %cst_9 = arith.constant -1.000000e+30 : f32
    %25 = vector.broadcast %cst_8 : f32 to vector<16x64xf32>
    %26 = vector.broadcast %cst_9 : f32 to vector<16x64xf32>
    %27 = arith.select %24, %25, %26 : vector<16x64xi1>, vector<16x64xf32>
    %28 = tpu.iota {dimensions = array<i32: 0>} : vector<64x32xi32>
    %29 = tpu.iota {dimensions = array<i32: 1>} : vector<64x32xi32>
    %c4_i32 = arith.constant 4 : i32
    %30 = vector.broadcast %c4_i32 : i32 to vector<64x32xi32>
    %31 = arith.shrsi %28, %30 : vector<64x32xi32>
    %c3_i32 = arith.constant 3 : i32
    %32 = vector.broadcast %c3_i32 : i32 to vector<64x32xi32>
    %33 = arith.shrsi %29, %32 : vector<64x32xi32>
    %34 = arith.cmpi eq, %31, %33 : vector<64x32xi32>
    %35 = arith.extui %34 : vector<64x32xi1> to vector<64x32xi32>
    %36 = arith.sitofp %35 : vector<64x32xi32> to vector<64x32xf32>
    %37 = tpu.iota {dimensions = array<i32: 0>} : vector<64x64xi32>
    %38 = tpu.iota {dimensions = array<i32: 1>} : vector<64x64xi32>
    %c4_i32_10 = arith.constant 4 : i32
    %39 = vector.broadcast %c4_i32_10 : i32 to vector<64x64xi32>
    %40 = arith.shrsi %37, %39 : vector<64x64xi32>
    %c4_i32_11 = arith.constant 4 : i32
    %41 = vector.broadcast %c4_i32_11 : i32 to vector<64x64xi32>
    %42 = arith.shrsi %38, %41 : vector<64x64xi32>
    %43 = arith.cmpi eq, %40, %42 : vector<64x64xi32>
    %44 = arith.extui %43 : vector<64x64xi1> to vector<64x64xi32>
    %45 = arith.sitofp %44 : vector<64x64xi32> to vector<64x64xf32>
    %c48 = arith.constant 48 : index
    %c0_12 = arith.constant 0 : index
    %46 = vector.load %arg2[%c48, %c0_12] : memref<368x128xf32, #tpu.memory_space<vmem>>, vector<32x96xf32>
    %c80 = arith.constant 80 : index
    %c0_13 = arith.constant 0 : index
    %47 = vector.load %arg2[%c80, %c0_13] : memref<368x128xf32, #tpu.memory_space<vmem>>, vector<32x32xf32>
    %c112 = arith.constant 112 : index
    %c0_14 = arith.constant 0 : index
    %48 = vector.load %arg2[%c112, %c0_14] : memref<368x128xf32, #tpu.memory_space<vmem>>, vector<32x64xf32>
    %c144 = arith.constant 144 : index
    %c0_15 = arith.constant 0 : index
    %49 = vector.load %arg2[%c144, %c0_15] : memref<368x128xf32, #tpu.memory_space<vmem>>, vector<64x32xf32>
    %c17 = arith.constant 17 : index
    %c0_16 = arith.constant 0 : index
    %50 = vector.load %arg3[%c17, %c0_16] : memref<40x128xf32, #tpu.memory_space<vmem>>, vector<1x96xf32>
    %c18 = arith.constant 18 : index
    %c0_17 = arith.constant 0 : index
    %51 = vector.load %arg3[%c18, %c0_17] : memref<40x128xf32, #tpu.memory_space<vmem>>, vector<1x32xf32>
    %c19 = arith.constant 19 : index
    %c0_18 = arith.constant 0 : index
    %52 = vector.load %arg3[%c19, %c0_18] : memref<40x128xf32, #tpu.memory_space<vmem>>, vector<1x32xf32>
    %c20 = arith.constant 20 : index
    %c0_19 = arith.constant 0 : index
    %53 = vector.load %arg3[%c20, %c0_19] : memref<40x128xf32, #tpu.memory_space<vmem>>, vector<1x32xf32>
    %c21 = arith.constant 21 : index
    %c0_20 = arith.constant 0 : index
    %54 = vector.load %arg3[%c21, %c0_20] : memref<40x128xf32, #tpu.memory_space<vmem>>, vector<1x64xf32>
    %c22 = arith.constant 22 : index
    %c0_21 = arith.constant 0 : index
    %55 = vector.load %arg3[%c22, %c0_21] : memref<40x128xf32, #tpu.memory_space<vmem>>, vector<1x32xf32>
    %c23 = arith.constant 23 : index
    %c0_22 = arith.constant 0 : index
    %56 = vector.load %arg3[%c23, %c0_22] : memref<40x128xf32, #tpu.memory_space<vmem>>, vector<1x32xf32>
    %c24 = arith.constant 24 : index
    %c0_23 = arith.constant 0 : index
    %57 = vector.load %arg3[%c24, %c0_23] : memref<40x128xf32, #tpu.memory_space<vmem>>, vector<1x32xf32>
    %cst_24 = arith.constant dense<0.000000e+00> : vector<16x96xf32>
    %58 = tpu.matmul %9, %46, %cst_24 {dimension_numbers = #tpu.dot_dimension_numbers<[1], [0], [0], [1], [0, 0, 1, 1], [], []>} : vector<16x32xf32>, vector<32x96xf32>, vector<16x96xf32> -> vector<16x96xf32>
    %59 = vector.broadcast %50 : vector<1x96xf32> to vector<16x96xf32>
    %60 = arith.addf %58, %59 : vector<16x96xf32>
    %61 = vector.extract_strided_slice %60 {offsets = [0, 0], sizes = [16, 32], strides = [1, 1]} : vector<16x96xf32> to vector<16x32xf32>
    %62 = vector.extract_strided_slice %60 {offsets = [0, 32], sizes = [16, 32], strides = [1, 1]} : vector<16x96xf32> to vector<16x32xf32>
    %63 = vector.extract_strided_slice %60 {offsets = [0, 64], sizes = [16, 32], strides = [1, 1]} : vector<16x96xf32> to vector<16x32xf32>
    %64 = tpu.concatenate %62, %62, %62, %62 in 0 : vector<16x32xf32>, vector<16x32xf32>, vector<16x32xf32>, vector<16x32xf32> -> vector<64x32xf32>
    %65 = arith.mulf %64, %36 : vector<64x32xf32>
    %66 = tpu.concatenate %63, %63, %63, %63 in 0 : vector<16x32xf32>, vector<16x32xf32>, vector<16x32xf32>, vector<16x32xf32> -> vector<64x32xf32>
    %67 = arith.mulf %66, %36 : vector<64x32xf32>
    %cst_25 = arith.constant dense<0.000000e+00> : vector<16x64xf32>
    %68 = tpu.matmul %61, %65, %cst_25 {dimension_numbers = #tpu.dot_dimension_numbers<[1], [1], [0], [0], [0, 0, 1, 0], [], []>} : vector<16x32xf32>, vector<64x32xf32>, vector<16x64xf32> -> vector<16x64xf32>
    %69 = arith.addf %68, %27 : vector<16x64xf32>
    %cst_26 = arith.constant dense<0xFF800000> : vector<16xf32>
    %70 = vector.multi_reduction <maximumf>, %69, %cst_26 [1] : vector<16x64xf32> to vector<16xf32>
    %71 = vector.shape_cast %70 : vector<16xf32> to vector<16x1xf32>
    %72 = vector.broadcast %71 : vector<16x1xf32> to vector<16x64xf32>
    %73 = arith.subf %69, %72 : vector<16x64xf32>
    %74 = math.exp %73 : vector<16x64xf32>
    %cst_27 = arith.constant dense<0.000000e+00> : vector<16x64xf32>
    %75 = tpu.matmul %74, %45, %cst_27 {dimension_numbers = #tpu.dot_dimension_numbers<[1], [0], [0], [1], [0, 0, 1, 1], [], []>} : vector<16x64xf32>, vector<64x64xf32>, vector<16x64xf32> -> vector<16x64xf32>
    %76 = arith.divf %74, %75 : vector<16x64xf32>
    %cst_28 = arith.constant dense<0.000000e+00> : vector<16x32xf32>
    %77 = tpu.matmul %76, %67, %cst_28 {dimension_numbers = #tpu.dot_dimension_numbers<[1], [0], [0], [1], [0, 0, 1, 1], [], []>} : vector<16x64xf32>, vector<64x32xf32>, vector<16x32xf32> -> vector<16x32xf32>
    %cst_29 = arith.constant dense<0.000000e+00> : vector<16x32xf32>
    %78 = tpu.matmul %77, %47, %cst_29 {dimension_numbers = #tpu.dot_dimension_numbers<[1], [0], [0], [1], [0, 0, 1, 1], [], []>} : vector<16x32xf32>, vector<32x32xf32>, vector<16x32xf32> -> vector<16x32xf32>
    %79 = vector.broadcast %51 : vector<1x32xf32> to vector<16x32xf32>
    %80 = arith.addf %78, %79 : vector<16x32xf32>
    %81 = arith.addf %9, %80 : vector<16x32xf32>
    %cst_30 = arith.constant dense<0.000000e+00> : vector<16xf32>
    %82 = vector.multi_reduction <add>, %81, %cst_30 [1] : vector<16x32xf32> to vector<16xf32>
    %83 = vector.shape_cast %82 : vector<16xf32> to vector<16x1xf32>
    %cst_31 = arith.constant 3.200000e+01 : f32
    %84 = vector.broadcast %cst_31 : f32 to vector<16x1xf32>
    %85 = arith.divf %83, %84 : vector<16x1xf32>
    %86 = vector.broadcast %85 : vector<16x1xf32> to vector<16x32xf32>
    %87 = arith.subf %81, %86 : vector<16x32xf32>
    %88 = arith.mulf %87, %87 : vector<16x32xf32>
    %cst_32 = arith.constant dense<0.000000e+00> : vector<16xf32>
    %89 = vector.multi_reduction <add>, %88, %cst_32 [1] : vector<16x32xf32> to vector<16xf32>
    %90 = vector.shape_cast %89 : vector<16xf32> to vector<16x1xf32>
    %cst_33 = arith.constant 3.200000e+01 : f32
    %91 = vector.broadcast %cst_33 : f32 to vector<16x1xf32>
    %92 = arith.divf %90, %91 : vector<16x1xf32>
    %93 = vector.broadcast %85 : vector<16x1xf32> to vector<16x32xf32>
    %94 = arith.subf %81, %93 : vector<16x32xf32>
    %cst_34 = arith.constant 9.99999974E-6 : f32
    %95 = vector.broadcast %cst_34 : f32 to vector<16x1xf32>
    %96 = arith.addf %92, %95 : vector<16x1xf32>
    %97 = math.rsqrt %96 : vector<16x1xf32>
    %98 = vector.broadcast %97 : vector<16x1xf32> to vector<16x32xf32>
    %99 = arith.mulf %94, %98 : vector<16x32xf32>
    %100 = vector.broadcast %52 : vector<1x32xf32> to vector<16x32xf32>
    %101 = arith.mulf %99, %100 : vector<16x32xf32>
    %102 = vector.broadcast %53 : vector<1x32xf32> to vector<16x32xf32>
    %103 = arith.addf %101, %102 : vector<16x32xf32>
    %cst_35 = arith.constant dense<0.000000e+00> : vector<16x64xf32>
    %104 = tpu.matmul %103, %48, %cst_35 {dimension_numbers = #tpu.dot_dimension_numbers<[1], [0], [0], [1], [0, 0, 1, 1], [], []>} : vector<16x32xf32>, vector<32x64xf32>, vector<16x64xf32> -> vector<16x64xf32>
    %105 = vector.broadcast %54 : vector<1x64xf32> to vector<16x64xf32>
    %106 = arith.addf %104, %105 : vector<16x64xf32>
    %cst_36 = arith.constant 0.000000e+00 : f32
    %107 = vector.broadcast %cst_36 : f32 to vector<16x64xf32>
    %108 = arith.maximumf %106, %107 : vector<16x64xf32>
    %cst_37 = arith.constant dense<0.000000e+00> : vector<16x32xf32>
    %109 = tpu.matmul %108, %49, %cst_37 {dimension_numbers = #tpu.dot_dimension_numbers<[1], [0], [0], [1], [0, 0, 1, 1], [], []>} : vector<16x64xf32>, vector<64x32xf32>, vector<16x32xf32> -> vector<16x32xf32>
    %110 = vector.broadcast %55 : vector<1x32xf32> to vector<16x32xf32>
    %111 = arith.addf %109, %110 : vector<16x32xf32>
    %112 = arith.addf %103, %111 : vector<16x32xf32>
    %cst_38 = arith.constant dense<0.000000e+00> : vector<16xf32>
    %113 = vector.multi_reduction <add>, %112, %cst_38 [1] : vector<16x32xf32> to vector<16xf32>
    %114 = vector.shape_cast %113 : vector<16xf32> to vector<16x1xf32>
    %cst_39 = arith.constant 3.200000e+01 : f32
    %115 = vector.broadcast %cst_39 : f32 to vector<16x1xf32>
    %116 = arith.divf %114, %115 : vector<16x1xf32>
    %117 = vector.broadcast %116 : vector<16x1xf32> to vector<16x32xf32>
    %118 = arith.subf %112, %117 : vector<16x32xf32>
    %119 = arith.mulf %118, %118 : vector<16x32xf32>
    %cst_40 = arith.constant dense<0.000000e+00> : vector<16xf32>
    %120 = vector.multi_reduction <add>, %119, %cst_40 [1] : vector<16x32xf32> to vector<16xf32>
    %121 = vector.shape_cast %120 : vector<16xf32> to vector<16x1xf32>
    %cst_41 = arith.constant 3.200000e+01 : f32
    %122 = vector.broadcast %cst_41 : f32 to vector<16x1xf32>
    %123 = arith.divf %121, %122 : vector<16x1xf32>
    %124 = vector.broadcast %116 : vector<16x1xf32> to vector<16x32xf32>
    %125 = arith.subf %112, %124 : vector<16x32xf32>
    %cst_42 = arith.constant 9.99999974E-6 : f32
    %126 = vector.broadcast %cst_42 : f32 to vector<16x1xf32>
    %127 = arith.addf %123, %126 : vector<16x1xf32>
    %128 = math.rsqrt %127 : vector<16x1xf32>
    %129 = vector.broadcast %128 : vector<16x1xf32> to vector<16x32xf32>
    %130 = arith.mulf %125, %129 : vector<16x32xf32>
    %131 = vector.broadcast %56 : vector<1x32xf32> to vector<16x32xf32>
    %132 = arith.mulf %130, %131 : vector<16x32xf32>
    %133 = vector.broadcast %57 : vector<1x32xf32> to vector<16x32xf32>
    %134 = arith.addf %132, %133 : vector<16x32xf32>
    %c208 = arith.constant 208 : index
    %c0_43 = arith.constant 0 : index
    %135 = vector.load %arg2[%c208, %c0_43] : memref<368x128xf32, #tpu.memory_space<vmem>>, vector<32x96xf32>
    %c240 = arith.constant 240 : index
    %c0_44 = arith.constant 0 : index
    %136 = vector.load %arg2[%c240, %c0_44] : memref<368x128xf32, #tpu.memory_space<vmem>>, vector<32x32xf32>
    %c272 = arith.constant 272 : index
    %c0_45 = arith.constant 0 : index
    %137 = vector.load %arg2[%c272, %c0_45] : memref<368x128xf32, #tpu.memory_space<vmem>>, vector<32x64xf32>
    %c304 = arith.constant 304 : index
    %c0_46 = arith.constant 0 : index
    %138 = vector.load %arg2[%c304, %c0_46] : memref<368x128xf32, #tpu.memory_space<vmem>>, vector<64x32xf32>
    %c25 = arith.constant 25 : index
    %c0_47 = arith.constant 0 : index
    %139 = vector.load %arg3[%c25, %c0_47] : memref<40x128xf32, #tpu.memory_space<vmem>>, vector<1x96xf32>
    %c26 = arith.constant 26 : index
    %c0_48 = arith.constant 0 : index
    %140 = vector.load %arg3[%c26, %c0_48] : memref<40x128xf32, #tpu.memory_space<vmem>>, vector<1x32xf32>
    %c27 = arith.constant 27 : index
    %c0_49 = arith.constant 0 : index
    %141 = vector.load %arg3[%c27, %c0_49] : memref<40x128xf32, #tpu.memory_space<vmem>>, vector<1x32xf32>
    %c28 = arith.constant 28 : index
    %c0_50 = arith.constant 0 : index
    %142 = vector.load %arg3[%c28, %c0_50] : memref<40x128xf32, #tpu.memory_space<vmem>>, vector<1x32xf32>
    %c29 = arith.constant 29 : index
    %c0_51 = arith.constant 0 : index
    %143 = vector.load %arg3[%c29, %c0_51] : memref<40x128xf32, #tpu.memory_space<vmem>>, vector<1x64xf32>
    %c30 = arith.constant 30 : index
    %c0_52 = arith.constant 0 : index
    %144 = vector.load %arg3[%c30, %c0_52] : memref<40x128xf32, #tpu.memory_space<vmem>>, vector<1x32xf32>
    %c31 = arith.constant 31 : index
    %c0_53 = arith.constant 0 : index
    %145 = vector.load %arg3[%c31, %c0_53] : memref<40x128xf32, #tpu.memory_space<vmem>>, vector<1x32xf32>
    %c32 = arith.constant 32 : index
    %c0_54 = arith.constant 0 : index
    %146 = vector.load %arg3[%c32, %c0_54] : memref<40x128xf32, #tpu.memory_space<vmem>>, vector<1x32xf32>
    %cst_55 = arith.constant dense<0.000000e+00> : vector<16x96xf32>
    %147 = tpu.matmul %134, %135, %cst_55 {dimension_numbers = #tpu.dot_dimension_numbers<[1], [0], [0], [1], [0, 0, 1, 1], [], []>} : vector<16x32xf32>, vector<32x96xf32>, vector<16x96xf32> -> vector<16x96xf32>
    %148 = vector.broadcast %139 : vector<1x96xf32> to vector<16x96xf32>
    %149 = arith.addf %147, %148 : vector<16x96xf32>
    %150 = vector.extract_strided_slice %149 {offsets = [0, 0], sizes = [16, 32], strides = [1, 1]} : vector<16x96xf32> to vector<16x32xf32>
    %151 = vector.extract_strided_slice %149 {offsets = [0, 32], sizes = [16, 32], strides = [1, 1]} : vector<16x96xf32> to vector<16x32xf32>
    %152 = vector.extract_strided_slice %149 {offsets = [0, 64], sizes = [16, 32], strides = [1, 1]} : vector<16x96xf32> to vector<16x32xf32>
    %153 = tpu.concatenate %151, %151, %151, %151 in 0 : vector<16x32xf32>, vector<16x32xf32>, vector<16x32xf32>, vector<16x32xf32> -> vector<64x32xf32>
    %154 = arith.mulf %153, %36 : vector<64x32xf32>
    %155 = tpu.concatenate %152, %152, %152, %152 in 0 : vector<16x32xf32>, vector<16x32xf32>, vector<16x32xf32>, vector<16x32xf32> -> vector<64x32xf32>
    %156 = arith.mulf %155, %36 : vector<64x32xf32>
    %cst_56 = arith.constant dense<0.000000e+00> : vector<16x64xf32>
    %157 = tpu.matmul %150, %154, %cst_56 {dimension_numbers = #tpu.dot_dimension_numbers<[1], [1], [0], [0], [0, 0, 1, 0], [], []>} : vector<16x32xf32>, vector<64x32xf32>, vector<16x64xf32> -> vector<16x64xf32>
    %158 = arith.addf %157, %27 : vector<16x64xf32>
    %cst_57 = arith.constant dense<0xFF800000> : vector<16xf32>
    %159 = vector.multi_reduction <maximumf>, %158, %cst_57 [1] : vector<16x64xf32> to vector<16xf32>
    %160 = vector.shape_cast %159 : vector<16xf32> to vector<16x1xf32>
    %161 = vector.broadcast %160 : vector<16x1xf32> to vector<16x64xf32>
    %162 = arith.subf %158, %161 : vector<16x64xf32>
    %163 = math.exp %162 : vector<16x64xf32>
    %cst_58 = arith.constant dense<0.000000e+00> : vector<16x64xf32>
    %164 = tpu.matmul %163, %45, %cst_58 {dimension_numbers = #tpu.dot_dimension_numbers<[1], [0], [0], [1], [0, 0, 1, 1], [], []>} : vector<16x64xf32>, vector<64x64xf32>, vector<16x64xf32> -> vector<16x64xf32>
    %165 = arith.divf %163, %164 : vector<16x64xf32>
    %cst_59 = arith.constant dense<0.000000e+00> : vector<16x32xf32>
    %166 = tpu.matmul %165, %156, %cst_59 {dimension_numbers = #tpu.dot_dimension_numbers<[1], [0], [0], [1], [0, 0, 1, 1], [], []>} : vector<16x64xf32>, vector<64x32xf32>, vector<16x32xf32> -> vector<16x32xf32>
    %cst_60 = arith.constant dense<0.000000e+00> : vector<16x32xf32>
    %167 = tpu.matmul %166, %136, %cst_60 {dimension_numbers = #tpu.dot_dimension_numbers<[1], [0], [0], [1], [0, 0, 1, 1], [], []>} : vector<16x32xf32>, vector<32x32xf32>, vector<16x32xf32> -> vector<16x32xf32>
    %168 = vector.broadcast %140 : vector<1x32xf32> to vector<16x32xf32>
    %169 = arith.addf %167, %168 : vector<16x32xf32>
    %170 = arith.addf %134, %169 : vector<16x32xf32>
    %cst_61 = arith.constant dense<0.000000e+00> : vector<16xf32>
    %171 = vector.multi_reduction <add>, %170, %cst_61 [1] : vector<16x32xf32> to vector<16xf32>
    %172 = vector.shape_cast %171 : vector<16xf32> to vector<16x1xf32>
    %cst_62 = arith.constant 3.200000e+01 : f32
    %173 = vector.broadcast %cst_62 : f32 to vector<16x1xf32>
    %174 = arith.divf %172, %173 : vector<16x1xf32>
    %175 = vector.broadcast %174 : vector<16x1xf32> to vector<16x32xf32>
    %176 = arith.subf %170, %175 : vector<16x32xf32>
    %177 = arith.mulf %176, %176 : vector<16x32xf32>
    %cst_63 = arith.constant dense<0.000000e+00> : vector<16xf32>
    %178 = vector.multi_reduction <add>, %177, %cst_63 [1] : vector<16x32xf32> to vector<16xf32>
    %179 = vector.shape_cast %178 : vector<16xf32> to vector<16x1xf32>
    %cst_64 = arith.constant 3.200000e+01 : f32
    %180 = vector.broadcast %cst_64 : f32 to vector<16x1xf32>
    %181 = arith.divf %179, %180 : vector<16x1xf32>
    %182 = vector.broadcast %174 : vector<16x1xf32> to vector<16x32xf32>
    %183 = arith.subf %170, %182 : vector<16x32xf32>
    %cst_65 = arith.constant 9.99999974E-6 : f32
    %184 = vector.broadcast %cst_65 : f32 to vector<16x1xf32>
    %185 = arith.addf %181, %184 : vector<16x1xf32>
    %186 = math.rsqrt %185 : vector<16x1xf32>
    %187 = vector.broadcast %186 : vector<16x1xf32> to vector<16x32xf32>
    %188 = arith.mulf %183, %187 : vector<16x32xf32>
    %189 = vector.broadcast %141 : vector<1x32xf32> to vector<16x32xf32>
    %190 = arith.mulf %188, %189 : vector<16x32xf32>
    %191 = vector.broadcast %142 : vector<1x32xf32> to vector<16x32xf32>
    %192 = arith.addf %190, %191 : vector<16x32xf32>
    %cst_66 = arith.constant dense<0.000000e+00> : vector<16x64xf32>
    %193 = tpu.matmul %192, %137, %cst_66 {dimension_numbers = #tpu.dot_dimension_numbers<[1], [0], [0], [1], [0, 0, 1, 1], [], []>} : vector<16x32xf32>, vector<32x64xf32>, vector<16x64xf32> -> vector<16x64xf32>
    %194 = vector.broadcast %143 : vector<1x64xf32> to vector<16x64xf32>
    %195 = arith.addf %193, %194 : vector<16x64xf32>
    %cst_67 = arith.constant 0.000000e+00 : f32
    %196 = vector.broadcast %cst_67 : f32 to vector<16x64xf32>
    %197 = arith.maximumf %195, %196 : vector<16x64xf32>
    %cst_68 = arith.constant dense<0.000000e+00> : vector<16x32xf32>
    %198 = tpu.matmul %197, %138, %cst_68 {dimension_numbers = #tpu.dot_dimension_numbers<[1], [0], [0], [1], [0, 0, 1, 1], [], []>} : vector<16x64xf32>, vector<64x32xf32>, vector<16x32xf32> -> vector<16x32xf32>
    %199 = vector.broadcast %144 : vector<1x32xf32> to vector<16x32xf32>
    %200 = arith.addf %198, %199 : vector<16x32xf32>
    %201 = arith.addf %192, %200 : vector<16x32xf32>
    %cst_69 = arith.constant dense<0.000000e+00> : vector<16xf32>
    %202 = vector.multi_reduction <add>, %201, %cst_69 [1] : vector<16x32xf32> to vector<16xf32>
    %203 = vector.shape_cast %202 : vector<16xf32> to vector<16x1xf32>
    %cst_70 = arith.constant 3.200000e+01 : f32
    %204 = vector.broadcast %cst_70 : f32 to vector<16x1xf32>
    %205 = arith.divf %203, %204 : vector<16x1xf32>
    %206 = vector.broadcast %205 : vector<16x1xf32> to vector<16x32xf32>
    %207 = arith.subf %201, %206 : vector<16x32xf32>
    %208 = arith.mulf %207, %207 : vector<16x32xf32>
    %cst_71 = arith.constant dense<0.000000e+00> : vector<16xf32>
    %209 = vector.multi_reduction <add>, %208, %cst_71 [1] : vector<16x32xf32> to vector<16xf32>
    %210 = vector.shape_cast %209 : vector<16xf32> to vector<16x1xf32>
    %cst_72 = arith.constant 3.200000e+01 : f32
    %211 = vector.broadcast %cst_72 : f32 to vector<16x1xf32>
    %212 = arith.divf %210, %211 : vector<16x1xf32>
    %213 = vector.broadcast %205 : vector<16x1xf32> to vector<16x32xf32>
    %214 = arith.subf %201, %213 : vector<16x32xf32>
    %cst_73 = arith.constant 9.99999974E-6 : f32
    %215 = vector.broadcast %cst_73 : f32 to vector<16x1xf32>
    %216 = arith.addf %212, %215 : vector<16x1xf32>
    %217 = math.rsqrt %216 : vector<16x1xf32>
    %218 = vector.broadcast %217 : vector<16x1xf32> to vector<16x32xf32>
    %219 = arith.mulf %214, %218 : vector<16x32xf32>
    %220 = vector.broadcast %145 : vector<1x32xf32> to vector<16x32xf32>
    %221 = arith.mulf %219, %220 : vector<16x32xf32>
    %222 = vector.broadcast %146 : vector<1x32xf32> to vector<16x32xf32>
    %223 = arith.addf %221, %222 : vector<16x32xf32>
    %c16 = arith.constant 16 : index
    %c0_74 = arith.constant 0 : index
    %224 = vector.load %arg2[%c16, %c0_74] : memref<368x128xf32, #tpu.memory_space<vmem>>, vector<32x128xf32>
    %c16_75 = arith.constant 16 : index
    %c0_76 = arith.constant 0 : index
    %225 = vector.load %arg3[%c16_75, %c0_76] : memref<40x128xf32, #tpu.memory_space<vmem>>, vector<1x128xf32>
    %cst_77 = arith.constant dense<0.000000e+00> : vector<16x128xf32>
    %226 = tpu.matmul %223, %224, %cst_77 {dimension_numbers = #tpu.dot_dimension_numbers<[1], [0], [0], [1], [0, 0, 1, 1], [], []>} : vector<16x32xf32>, vector<32x128xf32>, vector<16x128xf32> -> vector<16x128xf32>
    %227 = vector.broadcast %225 : vector<1x128xf32> to vector<16x128xf32>
    %228 = arith.addf %226, %227 : vector<16x128xf32>
    %c0_78 = arith.constant 0 : index
    %c0_79 = arith.constant 0 : index
    %229 = vector.load %arg4[%c0_78, %c0_79] : memref<16x128xf32, #tpu.memory_space<vmem>>, vector<16x128xf32>
    tpu.vector_store %arg4[%c0_78, %c0_79], %228 {strides = array<i32>} : memref<16x128xf32, #tpu.memory_space<vmem>>, vector<16x128xf32>,
    return
  }
  func.func @transform_0(%arg0: i32) -> (i32, i32) {
    %c0_i32 = arith.constant 0 : i32
    %c0_i32_0 = arith.constant 0 : i32
    %c0_i32_1 = arith.constant 0 : i32
    return %c0_i32, %c0_i32_0 : i32, i32
  }
  func.func @transform_1(%arg0: i32) -> (i32, i32) {
    %c0_i32 = arith.constant 0 : i32
    %c0_i32_0 = arith.constant 0 : i32
    %c0_i32_1 = arith.constant 0 : i32
    return %c0_i32, %c0_i32_0 : i32, i32
  }
  func.func @transform_2(%arg0: i32) -> (i32, i32) {
    %c0_i32 = arith.constant 0 : i32
    %c0_i32_0 = arith.constant 0 : i32
    %c0_i32_1 = arith.constant 0 : i32
    return %c0_i32, %c0_i32_0 : i32, i32
  }
  func.func @transform_3(%arg0: i32) -> (i32, i32) {
    %c0_i32 = arith.constant 0 : i32
    %c0_i32_0 = arith.constant 0 : i32
    %c0_i32_1 = arith.constant 0 : i32
    return %c0_i32, %c0_i32_0 : i32, i32
  }
}

</mosaic_0001>

<bundles_post_ra>
// kernel: transformer_forward.1
= control target key start
LH: loop header
LB: loop body
LE: loop exit
PB: predicated region body
PF: predicated region fallthrough
CT: control target
= control target key end

     0   :  { %8 = vsyncpa [#allocation3], 0  ;;  %s3095_s0 = inlined_call_operand.vmem [shape: s32[16,1], index: 0, kind: input, shape index: {}]   ;;  %s3096_s1 = inlined_call_operand.hbm [shape: f32[368,128], index: 1, kind: input, shape index: {}]   ;;  %s3097_s2 = inlined_call_operand.hbm [shape: f32[40,128], index: 2, kind: input, shape index: {}]   ;;  %s3098_s3 = inlined_call_operand.hbm [shape: f32[16,128], index: 3, kind: output, shape index: {}]  }
   0x1   :  { %9 = vsyncpa [#allocation6], 0 }
   0x2   :  { %10 = vsyncpa [#allocation4], 0  ;;  %s2562_s12 = smov [#allocation2]  }
   0x3   :  { %s18_s13 = sshll.u32 %s2562_s12, 4  ;;  %s19_s13 = int_to_ptr.vmem [resolvable:$true] %s18_s13 }
   0x4   :  { %s2504_s14 = scalar_lea.vmem %s19_s13, 5888  ;;  %p2509_p1 = scmp.lt.s32.totalorder %s19_s13, %s19_s13 }
   0x5   :  { %p2505_p0 = scmp.ne.s32.totalorder %s19_s13, %s2504_s14  ;;  %p2510_p2 = scmp.lt.s32.totalorder %s2504_s14, %s2504_s14 }
   0x7   :  { %p2511_p3 = por %p2510_p2, %p2509_p1 }
   0x9   :  { %p2512_p4 = pnand %p2511_p3, %p2505_p0 }
   0xb   :  { %2515 = shalt.err (!%p2512_p4)
}
   0xc   :  { %s2563_s15 = smov 128   ;;  %s2564_s16 = smov 8  }
   0xd   :  { %24 = dma.hbm_to_vmem [thread:$0]  %s3096_s1, 5888, %s19_s13, [#allocation3], %s2563_s15, %s2563_s15, %s2564_s16  }
   0xe   :  { %s2565_s19 = smov [#allocation5]  }
   0xf   :  { %s30_s20 = sshll.u32 %s2565_s19, 4  ;;  %s31_s20 = int_to_ptr.vmem [resolvable:$true] %s30_s20 }
  0x10   :  { %s2524_s21 = scalar_lea.vmem %s31_s20, 640  ;;  %p2529_p6 = scmp.lt.s32.totalorder %s31_s20, %s31_s20 }
  0x11   :  { %p2525_p5 = scmp.ne.s32.totalorder %s31_s20, %s2524_s21  ;;  %p2530_p7 = scmp.lt.s32.totalorder %s2524_s21, %s2524_s21 }
  0x13   :  { %p2531_p8 = por %p2530_p7, %p2529_p6 }
  0x15   :  { %p2532_p9 = pnand %p2531_p8, %p2525_p5 }
  0x17   :  { %2535 = shalt.err (!%p2532_p9)
}
  0x18   :  { %36 = dma.hbm_to_vmem [thread:$0]  %s3097_s2, 640, %s31_s20, [#allocation6], %s2563_s15, %s2563_s15, %s2564_s16  }
  0x19   :  { %2556 = dma.done.wait [#allocation3], 5888  }
  0x1a   :  { %2557 = vsyncadd [#allocation3], 4294961408 }
  0x1b   :  { %2558 = dma.done.wait [#allocation6], 640  }
  0x1c   :  { %2559 = vsyncadd [#allocation6], 4294966656  ;;  %v2566_v0 = vmov 0   ;;  %v43_v1 = vld [vmem:[%s3095_s0] sm:$0xff]  ;;  %v60_v2 = vld [vmem:[#allocation2 + $0x8] sm:$0xff]  ;;  %v45_v6 = vlaneseq  ;;  %vm63_vm0 = vcmask 130048  }
  0x1d   :  { %2463 = vset.pattern.permute.xlu0 %v2566_v0  ;;  %2215 = vmatprep.subr.mxu0 %v60_v2  ;;  %v59_v3 = vld [vmem:[#allocation2] sm:$0xff]  ;;  %v44_v4 = vld [vmem:[%s3095_s0 + $0x8] sm:$0xff]  ;;  %v2567_v9 = vmov 0.0   ;;  %v228_v14 = vld [vmem:[#allocation2 + $0x38] sm:$0xff]  ;;  %s2568_s0 = smov 32   ;;  %vm259_vm11 = vcmask 261120  }
  0x1e   :  { %48 = vperm.xlu0 %2463, %v43_v1   ;;  %2216 = vmatpush3.msra.mxu0 %v60_v2  ;;  %v230_v5 = vld [vmem:[#allocation2 + $0x48] sm:$0xff]  ;;  %v2612_v7 = vand.u32 127, %v45_v6  ;;  %v229_v13 = vld [vmem:[#allocation2 + $0x40] sm:$0xff]  ;;  %v2616_v15 = vshrl.u32 %v45_v6, 7  ;;  %v227_v16 = vld [vmem:[#allocation2 + $0x30] sm:$0xff]  ;;  %s2569_s2 = smov 96  }
  0x1f   :  { %2217 = vmatprep.subr.mxu0 %v59_v3  ;;  %2222 = vmatprep.subr.mxu1 %v230_v5  ;;  %v61_v42 = vld [vmem:[#allocation5] sm:$0xff]  ;;  %v62_v43 = vld [vmem:[#allocation5 + $0x8] sm:$0xff]  ;;  %v2010_v49 = vld [vmem:[#allocation5 + $0x11] ss:$0 sm:$0xff]  ;;  %s2572_s27 = smov 64   ;;  %s2573_s28 = smov [#allocation7]  }
  0x20   :  { %2218 = vmatpush3.msra.mxu0 %v59_v3  ;;  %2223 = vmatpush3.msra.mxu1 %v230_v5  ;;  %v177_v17 = vshra.s32 %v2612_v7, 3  ;;  %v2620_v18 = vadd.s32 56, %v2616_v15  ;;  %v2623_v19 = vadd.s32 48, %v2616_v15  ;;  %v2626_v20 = vadd.s32 40, %v2616_v15  ;;  %s1977_s29 = sshll.u32 %s2573_s28, 4  ;;  %s1978_s29 = int_to_ptr.vmem [resolvable:$true] %s1977_s29 }
  0x21   :  { %2224 = vmatprep.subr.mxu1 %v229_v13  ;;  %v2629_v21 = vadd.s32 32, %v2616_v15  ;;  %v2632_v22 = vadd.s32 24, %v2616_v15  ;;  %v2635_v23 = vadd.s32 8, %v2616_v15  ;;  %v2643_v29 = vadd.s32 16, %v2616_v15  ;;  %s2536_s30 = scalar_lea.vmem %s1978_s29, 256  ;;  %p2541_p11 = scmp.lt.s32.totalorder %s1978_s29, %s1978_s29 }
  0x22   :  { %51 = vperm.xlu0 %2463, %v44_v4   ;;  %2225 = vmatpush3.msra.mxu1 %v229_v13  ;;  %v176_v24 = vshra.s32 %v2620_v18, 4  ;;  %v175_v25 = vshra.s32 %v2623_v19, 4  ;;  %v174_v26 = vshra.s32 %v2626_v20, 4  ;;  %v169_v38 = vshra.s32 %v2616_v15, 4  ;;  %p2537_p10 = scmp.ne.s32.totalorder %s1978_s29, %s2536_s30  ;;  %p2542_p12 = scmp.lt.s32.totalorder %s2536_s30, %s2536_s30 }
  0x23   :  { %2226 = vmatprep.subr.mxu1 %v228_v14  ;;  %v173_v27 = vshra.s32 %v2629_v21, 4  ;;  %v172_v28 = vshra.s32 %v2632_v22, 4  ;;  %v170_v30 = vshra.s32 %v2635_v23, 4  ;;  %v171_v35 = vshra.s32 %v2643_v29, 4 }
  0x24   :  { %2227 = vmatpush3.msra.mxu1 %v228_v14  ;;  %vm185_vm3 = vcmp.eq.s32.totalorder %v176_v24, %v177_v17  ;;  %vm184_vm4 = vcmp.eq.s32.totalorder %v175_v25, %v177_v17  ;;  %vm183_vm5 = vcmp.eq.s32.totalorder %v174_v26, %v177_v17  ;;  %vm178_vm10 = vcmp.eq.s32.totalorder %v169_v38, %v177_v17  ;;  %p2543_p13 = por %p2542_p12, %p2541_p11 }
  0x25   :  { %2228 = vmatprep.subr.mxu1 %v227_v16  ;;  %v2652_v31 = vsel %vm185_vm3, 1.0, %v2567_v9  ;;  %v2654_v32 = vsel %vm183_vm5, 1.0, %v2567_v9  ;;  %vm181_vm6 = vcmp.eq.s32.totalorder %v172_v28, %v177_v17  ;;  %v2660_v33 = vsel %vm184_vm4, 1.0, %v2567_v9 }
  0x26   :  { %2229 = vmatpush3.msra.mxu1 %v227_v16  ;;  %363 = vrot.lane.b32.xlu1 %v2652_v31, %s2568_s0  ;;  %v2662_v34 = vsel %vm181_vm6, 1.0, %v2567_v9  ;;  %vm182_vm7 = vcmp.eq.s32.totalorder %v173_v27, %v177_v17  ;;  %vm179_vm8 = vcmp.eq.s32.totalorder %v170_v30, %v177_v17  ;;  %vm180_vm9 = vcmp.eq.s32.totalorder %v171_v35, %v177_v17  ;;  %p2544_p0 = pnand %p2543_p13, %p2537_p10 }
  0x27   :  { %359 = vrot.lane.b32.xlu0 %v2654_v32, %s2568_s0  ;;  %v2671_v36 = vsel %vm182_vm7, 1.0, %v2567_v9  ;;  %v2673_v37 = vsel %vm179_vm8, 1.0, %v2567_v9  ;;  %v2680_v39 = vsel %vm180_vm9, 1.0, %v2567_v9  ;;  %v2685_v40 = vsel %vm178_vm10, 1.0, %v2567_v9 }
  0x28   :  { %v148_v13 = vand.u32 15, %v2612_v7  ;;  %v150_v14 = vand.u32 1, %v2635_v23 }
  0x2a   :  { %361 = vrot.lane.b32.xlu1 %v2660_v33, %s2568_s0  ;;  %v151_v16 = vand.u32 1, %v148_v13  ;;  %v154_v17 = vshra.s32 %v148_v13, 1 }
  0x2b   :  { %355 = vrot.lane.b32.xlu0 %v2662_v34, %s2568_s0 }
  0x2c   :  { %vm153_vm12 = vcmp.eq.s32.totalorder %v150_v14, %v151_v16 }
  0x2e   :  { %357 = vrot.lane.b32.xlu1 %v2671_v36, %s2568_s0 }
  0x2f   :  { %351 = vrot.lane.b32.xlu0 %v2673_v37, %s2568_s0 }
  0x32   :  { %353 = vrot.lane.b32.xlu1 %v2680_v39, %s2568_s0 }
  0x36   :  { %349 = vrot.lane.b32.xlu1 %v2685_v40, %s2568_s0 }
  0x98   :  { %v2696_v47 = vpop.permute.xlu1 %363 }
  0x99   :  { %v49_v8 = vpop.permute.xlu0 %48 }
  0x9a   :  { %vm53_vm1 = vcmp.eq.s32.totalorder %v49_v8, %v2612_v7 }
  0x9b   :  { %v1990_v10 = vsel %vm53_vm1, 1.0, %v2567_v9 }
  0x9c   :  { %2219 = vmatprep.mubr.msk.f32.mxu0 %vm63_vm0, %v1990_v10  ;;  %v2698_v48 = vpop.permute.xlu1 %361 }
  0x9d   :  { %v52_v11 = vpop.permute.xlu0 %51 }
  0x9e   :  { %vm54_vm2 = vcmp.eq.s32.totalorder %v52_v11, %v2612_v7 }
  0x9f   :  { %v1991_v12 = vsel %vm54_vm2, 1.0, %v2567_v9  ;;  %vm534_vm2 = vcmask 523264  }
  0xa0   :  { %2220 = vmatmul.mubr.msk.f32.vlgmr.msra.gmra.mxu0 %vm63_vm0, %v1991_v12  ;;  %v2704_v53 = vpop.permute.xlu1 %357 }
  0xa1   :  { %v2700_v50 = vpop.permute.xlu0 %359 }
  0xa4   :  { %v2720_v60 = vpop.permute.xlu1 %353 }
  0xa5   :  { %v2715_v58 = vpop.permute.xlu0 %355 }
  0xa8   :  { %v2733_v1 = vpop.permute.xlu1 %349 }
  0xa9   :  { %v2728_v63 = vpop.permute.xlu0 %351 }
 0x160   :  { %v2221_v41 = vpop.f32.mrf.mxu0 }
 0x161   :  { %v2690_v46 = vadd.f32 %v2221_v41, %v62_v43  ;;  %v156_v41 = vshra.s32 %v2635_v23, 1  ;;  %v155_v43 = vshra.s32 %v2616_v15, 1 }
 0x162   :  { %v136_v44 = vpop.f32.mrf.mxu0 }
 0x163   :  { %v2688_v45 = vadd.f32 %v136_v44, %v61_v42  ;;  %v149_v42 = vand.u32 1, %v2616_v15  ;;  %vm158_vm13 = vcmp.le.s32.totalorder %v154_v17, %v156_v41  ;;  %vm157_vm15 = vcmp.le.s32.totalorder %v154_v17, %v155_v43 }
 0x164   :  { %vm160_vm0 = vmand %vm153_vm12, %vm158_vm13  ;;  %v2570_v44 = vmov -1e+30  }
 0x165   :  { %2230 = vmatprep.mubr.msk.f32.mxu1 %vm259_vm11, %v2688_v45  ;;  %vm152_vm14 = vcmp.eq.s32.totalorder %v149_v42, %v151_v16 }
 0x166   :  { %2231 = vmatmul.mubr.msk.f32.vlgmr.msra.gmra.mxu1 %vm259_vm11, %v2690_v46  ;;  %vm159_vm1 = vmand %vm152_vm14, %vm157_vm15 }
 0x226   :  { %v2232_v51 = vpop.f32.mrf.mxu1 }
 0x227   :  { %v2702_v52 = vadd.f32 %v2232_v51, %v2010_v49 }
 0x228   :  { %v332_v54 = vpop.f32.mrf.mxu1 }
 0x229   :  { %v2706_v55 = vadd.f32 %v2010_v49, %v332_v54  ;;  %v380_v56 = vmul.f32 %v2696_v47, %v2702_v52  ;;  %v378_v59 = vmul.f32 %v2700_v50, %v2702_v52  ;;  %v376_v62 = vmul.f32 %v2715_v58, %v2702_v52 }
 0x22a   :  { %v374_v2 = vmul.f32 %v2728_v63, %v2702_v52  ;;  %v2765_v49 = vsel %vm160_vm0, 0.0, %v2570_v44  ;;  %v2767_v54 = vsel %vm159_vm1, 0.0, %v2570_v44 }
 0x22b   :  { %435 = vrot.lane.b32.xlu0 %v380_v56, %s2569_s2  ;;  %2249 = vmatprep.mubr.msk.f32.mxu0 %vm259_vm11, %v2706_v55  ;;  %v379_v57 = vmul.f32 %v2698_v48, %v2706_v55  ;;  %v377_v61 = vmul.f32 %v2704_v53, %v2706_v55  ;;  %v375_v0 = vmul.f32 %v2720_v60, %v2706_v55 }
 0x22c   :  { %v373_v3 = vmul.f32 %v2733_v1, %v2706_v55 }
 0x22d   :  { %433 = vrot.lane.b32.xlu1 %v379_v57, %s2569_s2 }
 0x22f   :  { %431 = vrot.lane.b32.xlu0 %v378_v59, %s2569_s2 }
 0x231   :  { %429 = vrot.lane.b32.xlu1 %v377_v61, %s2569_s2 }
 0x233   :  { %427 = vrot.lane.b32.xlu0 %v376_v62, %s2569_s2 }
 0x235   :  { %425 = vrot.lane.b32.xlu1 %v375_v0, %s2569_s2  ;;  %v202_v0 = vshra.s32 %v2612_v7, 4 }
 0x237   :  { %423 = vrot.lane.b32.xlu0 %v374_v2, %s2569_s2  ;;  %vm2776_vm3 = vcmp.eq.s32.totalorder %v176_v24, %v202_v0  ;;  %vm2785_vm4 = vcmp.eq.s32.totalorder %v175_v25, %v202_v0  ;;  %vm2799_vm5 = vcmp.eq.s32.totalorder %v174_v26, %v202_v0  ;;  %vm2811_vm6 = vcmp.eq.s32.totalorder %v173_v27, %v202_v0  ;;  %v2043_v2 = vld [vmem:[#allocation5 + $0x16] ss:$0 sm:$0xff] }
 0x238   :  { %vm2825_vm7 = vcmp.eq.s32.totalorder %v172_v28, %v202_v0  ;;  %vm2839_vm8 = vcmp.eq.s32.totalorder %v171_v35, %v202_v0  ;;  %vm2853_vm9 = vcmp.eq.s32.totalorder %v170_v30, %v202_v0  ;;  %vm2867_vm10 = vcmp.eq.s32.totalorder %v169_v38, %v202_v0 }
 0x239   :  { %421 = vrot.lane.b32.xlu1 %v373_v3, %s2569_s2  ;;  %v2571_v3 = vmov 1.0  }
 0x23a   :  { %2252 = vmatprep.subr.msk.mxu1 %vm2776_vm3, %v2571_v3 }
 0x23b   :  { %2253 = vmatpush3.msk.msra.mxu1 %vm2776_vm3, %v2571_v3 }
 0x23c   :  { %2254 = vmatprep.subr.msk.mxu1 %vm2785_vm4, %v2571_v3 }
 0x23d   :  { %2255 = vmatpush3.msk.msra.mxu1 %vm2785_vm4, %v2571_v3 }
 0x23e   :  { %2256 = vmatprep.subr.msk.mxu1 %vm2799_vm5, %v2571_v3 }
 0x23f   :  { %2257 = vmatpush3.msk.msra.mxu1 %vm2799_vm5, %v2571_v3 }
 0x240   :  { %2258 = vmatprep.subr.msk.mxu1 %vm2811_vm6, %v2571_v3 }
 0x241   :  { %2259 = vmatpush3.msk.msra.mxu1 %vm2811_vm6, %v2571_v3 }
 0x242   :  { %2260 = vmatprep.subr.msk.mxu1 %vm2825_vm7, %v2571_v3 }
 0x243   :  { %2261 = vmatpush3.msk.msra.mxu1 %vm2825_vm7, %v2571_v3 }
 0x244   :  { %2262 = vmatprep.subr.msk.mxu1 %vm2839_vm8, %v2571_v3 }
 0x245   :  { %2263 = vmatpush3.msk.msra.mxu1 %vm2839_vm8, %v2571_v3 }
 0x246   :  { %2264 = vmatprep.subr.msk.mxu1 %vm2853_vm9, %v2571_v3 }
 0x247   :  { %2265 = vmatpush3.msk.msra.mxu1 %vm2853_vm9, %v2571_v3 }
 0x248   :  { %2266 = vmatprep.subr.msk.mxu1 %vm2867_vm10, %v2571_v3 }
 0x249   :  { %2267 = vmatpush3.msk.msra.mxu1 %vm2867_vm10, %v2571_v3 }
 0x29d   :  { %v436_v4 = vpop.permute.xlu0 %435 }
 0x29e   :  { %2233 = vmatprep.subr.msk.mxu0 %vm259_vm11, %v436_v4 }
 0x29f   :  { %v434_v5 = vpop.permute.xlu1 %433  ;;  %2234 = vmatpush3.xpose.msk.msra.mxu0 %vm259_vm11, %v436_v4 }
 0x2a0   :  { %2235 = vmatprep.subr.msk.mxu0 %vm259_vm11, %v434_v5 }
 0x2a1   :  { %v432_v6 = vpop.permute.xlu0 %431 }
 0x2a3   :  { %2236 = vmatpush3.xpose.msk.msra.mxu0 %vm259_vm11, %v434_v5  ;;  %v430_v8 = vpop.permute.xlu1 %429 }
 0x2a4   :  { %2237 = vmatprep.subr.msk.mxu0 %vm259_vm11, %v432_v6 }
 0x2a5   :  { %v428_v9 = vpop.permute.xlu0 %427 }
 0x2a7   :  { %2238 = vmatpush3.xpose.msk.msra.mxu0 %vm259_vm11, %v432_v6  ;;  %v426_v10 = vpop.permute.xlu1 %425 }
 0x2a8   :  { %2239 = vmatprep.subr.msk.mxu0 %vm259_vm11, %v430_v8 }
 0x2a9   :  { %v424_v11 = vpop.permute.xlu0 %423 }
 0x2ab   :  { %2240 = vmatpush3.xpose.msk.msra.mxu0 %vm259_vm11, %v430_v8  ;;  %v422_v12 = vpop.permute.xlu1 %421 }
 0x2ac   :  { %2241 = vmatprep.subr.msk.mxu0 %vm259_vm11, %v428_v9 }
 0x2af   :  { %2242 = vmatpush3.xpose.msk.msra.mxu0 %vm259_vm11, %v428_v9 }
 0x2b0   :  { %2243 = vmatprep.subr.msk.mxu0 %vm259_vm11, %v426_v10 }
 0x2b3   :  { %2244 = vmatpush3.xpose.msk.msra.mxu0 %vm259_vm11, %v426_v10 }
 0x2b4   :  { %2245 = vmatprep.subr.msk.mxu0 %vm259_vm11, %v424_v11 }
 0x2b7   :  { %2246 = vmatpush3.xpose.msk.msra.mxu0 %vm259_vm11, %v424_v11  ;;  %v234_v11 = vld [vmem:[#allocation2 + $0x68] sm:$0xff] }
 0x2b8   :  { %2247 = vmatprep.subr.msk.mxu0 %vm259_vm11, %v422_v12 }
 0x2bb   :  { %2248 = vmatpush3.xpose.msk.msra.mxu0 %vm259_vm11, %v422_v12  ;;  %v233_v12 = vld [vmem:[#allocation2 + $0x60] sm:$0xff] }
 0x2bc   :  { %2290 = vmatprep.subr.mxu0 %v234_v11 }
 0x2be   :  { %2250 = vmatmul.mubr.msk.f32.vlgmr.msra.gmra.mxu0 %vm259_vm11, %v2702_v52 }
 0x2bf   :  { %2291 = vmatpush3.msra.mxu0 %v234_v11 }
 0x2c0   :  { %2292 = vmatprep.subr.mxu0 %v233_v12 }
 0x2c1   :  { %2293 = vmatpush3.msra.mxu0 %v233_v12 }
 0x37e   :  { %v2251_v51 = vpop.f32.mrf.mxu0 }
 0x37f   :  { %v531_v56 = vadd.f32 %v2251_v51, %v2765_v49 }
 0x380   :  { %v525_v57 = vpop.f32.mrf.mxu0 }
 0x381   :  { %v526_v59 = vadd.f32 %v525_v57, %v2767_v54  ;;  %v538_v61 = vsel %vm534_vm2, %v531_v56, -inf }
 0x382   :  { %539 = vmax.xlane.f32.xlu1 %v538_v61  ;;  %v232_v61 = vld [vmem:[#allocation2 + $0x58] sm:$0xff] }
 0x383   :  { %v535_v62 = vsel %vm534_vm2, %v526_v59, -inf  ;;  %2294 = vmatprep.subr.mxu0 %v232_v61 }
 0x384   :  { %536 = vmax.xlane.f32.xlu0 %v535_v62  ;;  %2295 = vmatpush3.msra.mxu0 %v232_v61  ;;  %v231_v62 = vld [vmem:[#allocation2 + $0x50] sm:$0xff] }
 0x385   :  { %2296 = vmatprep.subr.mxu0 %v231_v62 }
 0x386   :  { %2297 = vmatpush3.msra.mxu0 %v231_v62  ;;  %v2038_v62 = vld [vmem:[#allocation5 + $0x13] ss:$0 sm:$0xff] }
 0x393   :  { %393 = vrot.lane.b32.xlu1 %v2660_v33, %s2572_s27 }
 0x397   :  { %389 = vrot.lane.b32.xlu1 %v2671_v36, %s2572_s27 }
 0x39a   :  { %395 = vrot.lane.b32.xlu0 %v2652_v31, %s2572_s27 }
 0x39b   :  { %385 = vrot.lane.b32.xlu1 %v2680_v39, %s2572_s27 }
 0x39e   :  { %391 = vrot.lane.b32.xlu0 %v2654_v32, %s2572_s27 }
 0x39f   :  { %381 = vrot.lane.b32.xlu1 %v2685_v40, %s2572_s27 }
 0x3a2   :  { %387 = vrot.lane.b32.xlu0 %v2662_v34, %s2572_s27 }
 0x3a6   :  { %383 = vrot.lane.b32.xlu0 %v2673_v37, %s2572_s27 }
 0x40b   :  { %v540_v15 = vpop.xlane.xlu1 %539 }
 0x40c   :  { %v542_v23 = vsub.f32 %v531_v56, %v540_v15 }
 0x40d   :  { %v537_v24 = vpop.xlane.xlu0 %536 }
 0x40e   :  { %v541_v25 = vsub.f32 %v526_v59, %v537_v24  ;;  %v545_v26 = vmul.f32 1.442695, %v542_v23  ;;  %v2035_v23 = vld [vmem:[#allocation5 + $0x12] ss:$0 sm:$0xff] }
 0x40f   :  { %v2886_v27 = vpop.permute.xlu1 %393 }
 0x410   :  { %v543_v28 = vmul.f32 1.442695, %v541_v25  ;;  %v411_v29 = vmul.f32 %v2886_v27, %v2706_v55 }
 0x411   :  { %v2890_v30 = vpop.permute.xlu0 %395 }
 0x412   :  { %2464 = vpow2.f32 %v543_v28  ;;  %v412_v31 = vmul.f32 %v2890_v30, %v2702_v52  ;;  %652 = vrot.lane.b32.xlu1 %v411_v29, %s2572_s27 }
 0x413   :  { %2466 = vpow2.f32 %v545_v26  ;;  %v2895_v32 = vpop.permute.xlu1 %389 }
 0x414   :  { %v409_v33 = vmul.f32 %v2895_v32, %v2706_v55  ;;  %654 = vrot.lane.b32.xlu0 %v412_v31, %s2572_s27 }
 0x415   :  { %v2900_v34 = vpop.permute.xlu0 %391 }
 0x416   :  { %v410_v35 = vmul.f32 %v2900_v34, %v2702_v52  ;;  %648 = vrot.lane.b32.xlu1 %v409_v33, %s2572_s27 }
 0x417   :  { %v2905_v36 = vpop.permute.xlu1 %385 }
 0x418   :  { %v407_v37 = vmul.f32 %v2905_v36, %v2706_v55  ;;  %650 = vrot.lane.b32.xlu0 %v410_v35, %s2572_s27 }
 0x419   :  { %v2910_v38 = vpop.permute.xlu0 %387 }
 0x41a   :  { %v408_v39 = vmul.f32 %v2910_v38, %v2702_v52  ;;  %644 = vrot.lane.b32.xlu1 %v407_v37, %s2572_s27 }
 0x41b   :  { %v2915_v40 = vpop.permute.xlu1 %381 }
 0x41c   :  { %v405_v5 = vmul.f32 %v2915_v40, %v2706_v55  ;;  %646 = vrot.lane.b32.xlu0 %v408_v39, %s2572_s27 }
 0x41d   :  { %v2920_v6 = vpop.permute.xlu0 %383 }
 0x41e   :  { %v406_v8 = vmul.f32 %v2920_v6, %v2702_v52  ;;  %640 = vrot.lane.b32.xlu1 %v405_v5, %s2572_s27 }
 0x41f   :  { %v2465_v9 = vpop.eup %2464 }
 0x420   :  { %v2467_v10 = vpop.eup %2466  ;;  %2268 = vmatprep.mubr.msk.f32.mxu1 %vm534_vm2, %v2465_v9  ;;  %642 = vrot.lane.b32.xlu0 %v406_v8, %s2572_s27 }
 0x421   :  { %2269 = vmatmul.mubr.msk.f32.vlgmr.msra.gmra.mxu1 %vm534_vm2, %v2467_v10 }
 0x484   :  { %v653_v55 = vpop.permute.xlu1 %652 }
 0x486   :  { %v655_v13 = vpop.permute.xlu0 %654 }
 0x487   :  { %2271 = vmatprep.subr.mxu1 %v655_v13 }
 0x488   :  { %v649_v52 = vpop.permute.xlu1 %648  ;;  %2272 = vmatpush3.msra.mxu1 %v655_v13  ;;  %v238_v13 = vld [vmem:[#allocation2 + $0x88] sm:$0xff] }
 0x489   :  { %2273 = vmatprep.subr.mxu1 %v653_v55 }
 0x48a   :  { %2274 = vmatpush3.msra.mxu1 %v653_v55  ;;  %v651_v14 = vpop.permute.xlu0 %650 }
 0x48b   :  { %2275 = vmatprep.subr.mxu1 %v651_v14 }
 0x48c   :  { %2276 = vmatpush3.msra.mxu1 %v651_v14  ;;  %v645_v16 = vpop.permute.xlu1 %644  ;;  %v235_v14 = vld [vmem:[#allocation2 + $0x70] sm:$0xff] }
 0x48d   :  { %2277 = vmatprep.subr.mxu1 %v649_v52 }
 0x48e   :  { %2278 = vmatpush3.msra.mxu1 %v649_v52  ;;  %v647_v17 = vpop.permute.xlu0 %646  ;;  %v236_v52 = vld [vmem:[#allocation2 + $0x78] sm:$0xff] }
 0x48f   :  { %2279 = vmatprep.subr.mxu1 %v647_v17 }
 0x490   :  { %2280 = vmatpush3.msra.mxu1 %v647_v17  ;;  %v641_v42 = vpop.permute.xlu1 %640  ;;  %v245_v17 = vld [vmem:[#allocation2 + $0xc0] sm:$0xff] }
 0x491   :  { %2281 = vmatprep.subr.mxu1 %v645_v16 }
 0x492   :  { %2282 = vmatpush3.msra.mxu1 %v645_v16  ;;  %v643_v41 = vpop.permute.xlu0 %642  ;;  %v246_v16 = vld [vmem:[#allocation2 + $0xc8] sm:$0xff] }
 0x493   :  { %2283 = vmatprep.subr.mxu1 %v643_v41  ;;  %2312 = vmatprep.subr.mxu0 %v246_v16 }
 0x494   :  { %2284 = vmatpush3.msra.mxu1 %v643_v41  ;;  %v244_v41 = vld [vmem:[#allocation2 + $0xb8] sm:$0xff] }
 0x495   :  { %2285 = vmatprep.subr.mxu1 %v641_v42 }
 0x496   :  { %2286 = vmatpush3.msra.mxu1 %v641_v42  ;;  %v243_v42 = vld [vmem:[#allocation2 + $0xb0] sm:$0xff] }
 0x497   :  { %2301 = vmatprep.subr.mxu1 %v238_v13 }
 0x4e1   :  { %v2270_v43 = vpop.f32.mrf.mxu1 }
 0x4e2   :  { %2468 = vrcp.f32 %v2270_v43 }
 0x4e3   :  { %v619_v44 = vpop.f32.mrf.mxu1 }
 0x4e4   :  { %2470 = vrcp.f32 %v619_v44 }
 0x4ef   :  { %v2469_v51 = vpop.eup %2468 }
 0x4f0   :  { %v631_v59 = vmul.f32 %v2469_v51, %v2467_v10 }
 0x4f1   :  { %v2471_v56 = vpop.eup %2470 }
 0x4f2   :  { %v629_v57 = vmul.f32 %v2471_v56, %v2465_v9 }
 0x4f4   :  { %2287 = vmatprep.mubr.msk.f32.mxu1 %vm534_vm2, %v629_v57 }
 0x4f5   :  { %2288 = vmatmul.mubr.msk.f32.vlgmr.msra.gmra.mxu1 %vm534_vm2, %v631_v59 }
 0x4f6   :  { %2302 = vmatpush3.msra.mxu1 %v238_v13 }
 0x5b5   :  { %v2289_v0 = vpop.f32.mrf.mxu1 }
 0x5b7   :  { %v736_v15 = vpop.f32.mrf.mxu1 }
 0x5b8   :  { %2298 = vmatprep.mubr.msk.f32.mxu0 %vm259_vm11, %v736_v15  ;;  %v2039_v15 = vld [vmem:[#allocation5 + $0x14] ss:$0 sm:$0xff] }
 0x5b9   :  { %2299 = vmatmul.mubr.msk.f32.vlgmr.msra.gmra.mxu0 %vm259_vm11, %v2289_v0 }
 0x5ba   :  { %2313 = vmatpush3.msra.mxu0 %v246_v16 }
 0x5bb   :  { %2314 = vmatprep.subr.mxu0 %v245_v17 }
 0x5bc   :  { %2315 = vmatpush3.msra.mxu0 %v245_v17 }
 0x5bd   :  { %2316 = vmatprep.subr.mxu0 %v244_v41 }
 0x5be   :  { %2317 = vmatpush3.msra.mxu0 %v244_v41 }
 0x5bf   :  { %2318 = vmatprep.subr.mxu0 %v243_v42 }
 0x5c0   :  { %2319 = vmatpush3.msra.mxu0 %v243_v42 }
 0x679   :  { %v2300_v24 = vpop.f32.mrf.mxu0 }
 0x67a   :  { %v827_v25 = vadd.f32 %v2300_v24, %v2035_v23 }
 0x67b   :  { %v821_v26 = vpop.f32.mrf.mxu0 }
 0x67c   :  { %v822_v28 = vadd.f32 %v2035_v23, %v821_v26  ;;  %v831_v29 = vadd.f32 %v827_v25, %v2690_v46 }
 0x67e   :  { %v835_v31 = vsel %vm259_vm11, %v831_v29, 0.0  ;;  %v830_v33 = vadd.f32 %v822_v28, %v2688_v45  ;;  %v237_v45 = vld [vmem:[#allocation2 + $0x80] sm:$0xff] }
 0x67f   :  { %836 = vadd.xlane.f32.xlu1 %v835_v31  ;;  %2303 = vmatprep.subr.mxu1 %v237_v45  ;;  %v242_v31 = vld [vmem:[#allocation2 + $0xa8] sm:$0xff] }
 0x680   :  { %v832_v35 = vsel %vm259_vm11, %v830_v33, 0.0  ;;  %2304 = vmatpush3.msra.mxu1 %v237_v45  ;;  %2320 = vmatprep.subr.mxu0 %v242_v31 }
 0x681   :  { %833 = vadd.xlane.f32.xlu0 %v832_v35  ;;  %2305 = vmatprep.subr.mxu1 %v236_v52  ;;  %v240_v35 = vld [vmem:[#allocation2 + $0x98] sm:$0xff] }
 0x682   :  { %2306 = vmatpush3.msra.mxu1 %v236_v52  ;;  %2321 = vmatpush3.msra.mxu0 %v242_v31  ;;  %v2047_v31 = vld [vmem:[#allocation5 + $0x18] ss:$0 sm:$0xff] }
 0x683   :  { %2307 = vmatprep.subr.mxu1 %v235_v14 }
 0x684   :  { %2308 = vmatpush3.msra.mxu1 %v235_v14 }
 0x708   :  { %v837_v37 = vpop.xlane.xlu1 %836 }
 0x709   :  { %v840_v39 = vmul.f32 0.03125, %v837_v37  ;;  %v239_v37 = vld [vmem:[#allocation2 + $0x90] sm:$0xff] }
 0x70a   :  { %v834_v5 = vpop.xlane.xlu0 %833 }
 0x70b   :  { %v839_v8 = vmul.f32 0.03125, %v834_v5  ;;  %v842_v9 = vsub.f32 %v831_v29, %v840_v39  ;;  %v2040_v39 = vld [vmem:[#allocation5 + $0x15] ss:$0 sm:$0xff] }
 0x70d   :  { %v841_v10 = vsub.f32 %v830_v33, %v839_v8  ;;  %v844_v55 = vmul.f32 %v842_v9, %v842_v9  ;;  %v241_v33 = vld [vmem:[#allocation2 + $0xa0] sm:$0xff] }
 0x70e   :  { %2322 = vmatprep.subr.mxu0 %v241_v33 }
 0x70f   :  { %v843_v11 = vmul.f32 %v841_v10, %v841_v10  ;;  %v848_v46 = vsel %vm259_vm11, %v844_v55, 0.0  ;;  %2323 = vmatpush3.msra.mxu0 %v241_v33 }
 0x710   :  { %2324 = vmatprep.subr.mxu0 %v240_v35 }
 0x711   :  { %v845_v12 = vsel %vm259_vm11, %v843_v11, 0.0  ;;  %2325 = vmatpush3.msra.mxu0 %v240_v35 }
 0x712   :  { %846 = vadd.xlane.f32.xlu0 %v845_v12  ;;  %2326 = vmatprep.subr.mxu0 %v239_v37 }
 0x713   :  { %2327 = vmatpush3.msra.mxu0 %v239_v37 }
 0x714   :  { %2361 = vmatprep.subr.msk.mxu0 %vm2776_vm3, %v2571_v3 }
 0x716   :  { %849 = vadd.xlane.f32.xlu0 %v848_v46 }
 0x79b   :  { %v847_v43 = vpop.xlane.xlu0 %846 }
 0x79c   :  { %v851_v44 = vmul.f32 0.03125, %v847_v43  ;;  %v1086_v43 = vld [vmem:[#allocation2 + $0xe8] sm:$0xff] }
 0x79d   :  { %2331 = vmatprep.subr.mxu1 %v1086_v43 }
 0x79e   :  { %v853_v51 = vadd.f32 1e-05, %v851_v44  ;;  %v1085_v44 = vld [vmem:[#allocation2 + $0xe0] sm:$0xff] }
 0x79f   :  { %v850_v56 = vpop.xlane.xlu0 %849 }
 0x7a0   :  { %2472 = vrsqrt.f32 %v853_v51  ;;  %v852_v57 = vmul.f32 0.03125, %v850_v56  ;;  %v1084_v51 = vld [vmem:[#allocation2 + $0xd8] sm:$0xff]  ;;  %v1083_v56 = vld [vmem:[#allocation2 + $0xd0] sm:$0xff] }
 0x7a2   :  { %v854_v59 = vadd.f32 1e-05, %v852_v57 }
 0x7a4   :  { %2474 = vrsqrt.f32 %v854_v59 }
 0x7ad   :  { %v2473_v61 = vpop.eup %2472 }
 0x7ae   :  { %v857_v0 = vmul.f32 %v2473_v61, %v841_v10 }
 0x7b0   :  { %v863_v23 = vmul.f32 %v2038_v62, %v857_v0 }
 0x7b1   :  { %v2475_v24 = vpop.eup %2474 }
 0x7b2   :  { %v858_v25 = vmul.f32 %v2475_v24, %v842_v9  ;;  %v869_v26 = vadd.f32 %v2039_v15, %v863_v23  ;;  %v2046_v24 = vld [vmem:[#allocation5 + $0x17] ss:$0 sm:$0xff] }
 0x7b4   :  { %v864_v28 = vmul.f32 %v2038_v62, %v858_v25  ;;  %2309 = vmatprep.mubr.msk.f32.mxu1 %vm259_vm11, %v869_v26 }
 0x7b6   :  { %v870_v29 = vadd.f32 %v2039_v15, %v864_v28 }
 0x7b8   :  { %2310 = vmatmul.mubr.msk.f32.vlgmr.msra.gmra.mxu1 %vm259_vm11, %v870_v29 }
 0x7b9   :  { %2332 = vmatpush3.msra.mxu1 %v1086_v43 }
 0x7ba   :  { %2333 = vmatprep.subr.mxu1 %v1085_v44 }
 0x7bb   :  { %2334 = vmatpush3.msra.mxu1 %v1085_v44 }
 0x7bc   :  { %2335 = vmatprep.subr.mxu1 %v1084_v51 }
 0x7bd   :  { %2336 = vmatpush3.msra.mxu1 %v1084_v51 }
 0x7be   :  { %2337 = vmatprep.subr.mxu1 %v1083_v56 }
 0x7bf   :  { %2338 = vmatpush3.msra.mxu1 %v1083_v56 }
 0x878   :  { %v2311_v5 = vpop.f32.mrf.mxu1 }
 0x879   :  { %v953_v8 = vadd.f32 %v2311_v5, %v2040_v39 }
 0x87a   :  { %v947_v9 = vpop.f32.mrf.mxu1 }
 0x87b   :  { %v948_v10 = vadd.f32 %v2040_v39, %v947_v9  ;;  %v957_v12 = vmax.f32 %v953_v8, 0.0  ;;  %v2048_v39 = vld [vmem:[#allocation5 + $0x19] ss:$0 sm:$0xff] }
 0x87d   :  { %v956_v11 = vmax.f32 %v948_v10, 0.0 }
 0x87f   :  { %2328 = vmatprep.mubr.msk.f32.mxu0 %vm534_vm2, %v956_v11 }
 0x880   :  { %2329 = vmatmul.mubr.msk.f32.vlgmr.msra.gmra.mxu0 %vm534_vm2, %v957_v12 }
 0x881   :  { %2362 = vmatpush3.msk.msra.mxu0 %vm2776_vm3, %v2571_v3 }
 0x882   :  { %2363 = vmatprep.subr.msk.mxu0 %vm2785_vm4, %v2571_v3 }
 0x883   :  { %2364 = vmatpush3.msk.msra.mxu0 %vm2785_vm4, %v2571_v3 }
 0x884   :  { %2365 = vmatprep.subr.msk.mxu0 %vm2799_vm5, %v2571_v3 }
 0x885   :  { %2366 = vmatpush3.msk.msra.mxu0 %vm2799_vm5, %v2571_v3 }
 0x886   :  { %2367 = vmatprep.subr.msk.mxu0 %vm2811_vm6, %v2571_v3 }
 0x887   :  { %2368 = vmatpush3.msk.msra.mxu0 %vm2811_vm6, %v2571_v3 }
 0x888   :  { %2369 = vmatprep.subr.msk.mxu0 %vm2825_vm7, %v2571_v3 }
 0x889   :  { %2370 = vmatpush3.msk.msra.mxu0 %vm2825_vm7, %v2571_v3 }
 0x88a   :  { %2371 = vmatprep.subr.msk.mxu0 %vm2839_vm8, %v2571_v3 }
 0x88b   :  { %2372 = vmatpush3.msk.msra.mxu0 %vm2839_vm8, %v2571_v3 }
 0x88c   :  { %2373 = vmatprep.subr.msk.mxu0 %vm2853_vm9, %v2571_v3 }
 0x88d   :  { %2374 = vmatpush3.msk.msra.mxu0 %vm2853_vm9, %v2571_v3 }
 0x88e   :  { %2375 = vmatprep.subr.msk.mxu0 %vm2867_vm10, %v2571_v3 }
 0x88f   :  { %2376 = vmatpush3.msk.msra.mxu0 %vm2867_vm10, %v2571_v3 }
 0x940   :  { %v2330_v4 = vpop.f32.mrf.mxu0 }
 0x941   :  { %v1040_v7 = vadd.f32 %v2330_v4, %v2043_v2 }
 0x942   :  { %v1034_v18 = vpop.f32.mrf.mxu0 }
 0x943   :  { %v1035_v19 = vadd.f32 %v2043_v2, %v1034_v18  ;;  %v1044_v20 = vadd.f32 %v1040_v7, %v870_v29 }
 0x945   :  { %v1048_v55 = vsel %vm259_vm11, %v1044_v20, 0.0  ;;  %v1043_v46 = vadd.f32 %v1035_v19, %v869_v26 }
 0x946   :  { %1049 = vadd.xlane.f32.xlu0 %v1048_v55 }
 0x947   :  { %v1045_v21 = vsel %vm259_vm11, %v1043_v46, 0.0 }
 0x948   :  { %1046 = vadd.xlane.f32.xlu1 %v1045_v21 }
 0x9cf   :  { %v1050_v13 = vpop.xlane.xlu0 %1049 }
 0x9d0   :  { %v1052_v45 = vmul.f32 0.03125, %v1050_v13 }
 0x9d1   :  { %v1047_v52 = vpop.xlane.xlu1 %1046 }
 0x9d2   :  { %v1054_v14 = vsub.f32 %v1044_v20, %v1052_v45  ;;  %v1051_v16 = vmul.f32 0.03125, %v1047_v52 }
 0x9d4   :  { %v1053_v22 = vsub.f32 %v1043_v46, %v1051_v16  ;;  %v1056_v3 = vmul.f32 %v1054_v14, %v1054_v14 }
 0x9d6   :  { %v1060_v17 = vsel %vm259_vm11, %v1056_v3, 0.0  ;;  %v1055_v41 = vmul.f32 %v1053_v22, %v1053_v22 }
 0x9d7   :  { %1061 = vadd.xlane.f32.xlu0 %v1060_v17 }
 0x9d8   :  { %v1057_v42 = vsel %vm259_vm11, %v1055_v41, 0.0 }
 0x9d9   :  { %1058 = vadd.xlane.f32.xlu1 %v1057_v42 }
 0xa60   :  { %v1062_v57 = vpop.xlane.xlu0 %1061 }
 0xa61   :  { %v1064_v59 = vmul.f32 0.03125, %v1062_v57 }
 0xa62   :  { %v1059_v61 = vpop.xlane.xlu1 %1058 }
 0xa63   :  { %v1066_v62 = vadd.f32 1e-05, %v1064_v59  ;;  %v1063_v0 = vmul.f32 0.03125, %v1059_v61 }
 0xa65   :  { %2476 = vrsqrt.f32 %v1066_v62  ;;  %v1065_v15 = vadd.f32 1e-05, %v1063_v0  ;;  %v1090_v62 = vld [vmem:[#allocation2 + $0x108] sm:$0xff]  ;;  %v1089_v0 = vld [vmem:[#allocation2 + $0x100] sm:$0xff] }
 0xa67   :  { %2478 = vrsqrt.f32 %v1065_v15 }
 0xa72   :  { %v2477_v23 = vpop.eup %2476 }
 0xa73   :  { %v1070_v25 = vmul.f32 %v2477_v23, %v1054_v14 }
 0xa74   :  { %v2479_v26 = vpop.eup %2478 }
 0xa75   :  { %v1069_v28 = vmul.f32 %v2479_v26, %v1053_v22  ;;  %v1076_v29 = vmul.f32 %v2046_v24, %v1070_v25 }
 0xa77   :  { %v1075_v33 = vmul.f32 %v2046_v24, %v1069_v28  ;;  %v2996_v37 = vadd.f32 %v2047_v31, %v1076_v29  ;;  %v1088_v29 = vld [vmem:[#allocation2 + $0xf8] sm:$0xff] }
 0xa79   :  { %v2994_v35 = vadd.f32 %v2047_v31, %v1075_v33  ;;  %v1087_v31 = vld [vmem:[#allocation2 + $0xf0] sm:$0xff] }
 0xa7b   :  { %2339 = vmatprep.mubr.msk.f32.mxu1 %vm259_vm11, %v2994_v35 }
 0xa7c   :  { %2340 = vmatmul.mubr.msk.f32.vlgmr.msra.gmra.mxu1 %vm259_vm11, %v2996_v37 }
 0xb3c   :  { %v2341_v5 = vpop.f32.mrf.mxu1 }
 0xb3d   :  { %v3002_v8 = vadd.f32 %v2341_v5, %v2048_v39  ;;  %v2073_v5 = vld [vmem:[#allocation5 + $0x1a] ss:$0 sm:$0xff] }
 0xb3e   :  { %v1187_v9 = vpop.f32.mrf.mxu1 }
 0xb3f   :  { %v1188_v10 = vadd.f32 %v2048_v39, %v1187_v9  ;;  %v1203_v11 = vmul.f32 %v3002_v8, %v2696_v47  ;;  %v1201_v2 = vmul.f32 %v3002_v8, %v2700_v50  ;;  %v1199_v4 = vmul.f32 %v3002_v8, %v2715_v58 }
 0xb40   :  { %v1197_v7 = vmul.f32 %v3002_v8, %v2728_v63 }
 0xb41   :  { %1234 = vrot.lane.b32.xlu1 %v1203_v11, %s2569_s2  ;;  %2358 = vmatprep.mubr.msk.f32.mxu1 %vm259_vm11, %v1188_v10  ;;  %v1202_v12 = vmul.f32 %v1188_v10, %v2698_v48  ;;  %v1200_v47 = vmul.f32 %v1188_v10, %v2704_v53  ;;  %v1198_v48 = vmul.f32 %v1188_v10, %v2720_v60 }
 0xb42   :  { %v1196_v50 = vmul.f32 %v1188_v10, %v2733_v1  ;;  %v1210_v14 = vmul.f32 %v1188_v10, %v2886_v27  ;;  %v1208_v16 = vmul.f32 %v1188_v10, %v2895_v32  ;;  %v1206_v22 = vmul.f32 %v1188_v10, %v2905_v36 }
 0xb43   :  { %1232 = vrot.lane.b32.xlu0 %v1202_v12, %s2569_s2  ;;  %v1204_v27 = vmul.f32 %v1188_v10, %v2915_v40  ;;  %v1207_v32 = vmul.f32 %v3002_v8, %v2910_v38 }
 0xb45   :  { %1230 = vrot.lane.b32.xlu1 %v1201_v2, %s2569_s2 }
 0xb47   :  { %1226 = vrot.lane.b32.xlu0 %v1199_v4, %s2569_s2 }
 0xb49   :  { %1228 = vrot.lane.b32.xlu1 %v1200_v47, %s2569_s2 }
 0xb4b   :  { %1222 = vrot.lane.b32.xlu0 %v1197_v7, %s2569_s2 }
 0xb4d   :  { %1224 = vrot.lane.b32.xlu1 %v1198_v48, %s2569_s2 }
 0xb51   :  { %1220 = vrot.lane.b32.xlu1 %v1196_v50, %s2569_s2 }
 0xbb3   :  { %v1235_v58 = vpop.permute.xlu1 %1234 }
 0xbb4   :  { %2342 = vmatprep.subr.msk.mxu1 %vm259_vm11, %v1235_v58 }
 0xbb5   :  { %2343 = vmatpush3.xpose.msk.msra.mxu1 %vm259_vm11, %v1235_v58  ;;  %v1233_v53 = vpop.permute.xlu0 %1232 }
 0xbb6   :  { %2344 = vmatprep.subr.msk.mxu1 %vm259_vm11, %v1233_v53 }
 0xbb7   :  { %v1231_v18 = vpop.permute.xlu1 %1230 }
 0xbb9   :  { %2345 = vmatpush3.xpose.msk.msra.mxu1 %vm259_vm11, %v1233_v53  ;;  %v1227_v63 = vpop.permute.xlu0 %1226 }
 0xbba   :  { %2346 = vmatprep.subr.msk.mxu1 %vm259_vm11, %v1231_v18 }
 0xbbb   :  { %v1229_v60 = vpop.permute.xlu1 %1228 }
 0xbbd   :  { %2347 = vmatpush3.xpose.msk.msra.mxu1 %vm259_vm11, %v1231_v18  ;;  %v1223_v19 = vpop.permute.xlu0 %1222 }
 0xbbe   :  { %2348 = vmatprep.subr.msk.mxu1 %vm259_vm11, %v1229_v60 }
 0xbbf   :  { %v1225_v1 = vpop.permute.xlu1 %1224 }
 0xbc1   :  { %2349 = vmatpush3.xpose.msk.msra.mxu1 %vm259_vm11, %v1229_v60 }
 0xbc2   :  { %2350 = vmatprep.subr.msk.mxu1 %vm259_vm11, %v1227_v63 }
 0xbc3   :  { %v1221_v20 = vpop.permute.xlu1 %1220 }
 0xbc5   :  { %2351 = vmatpush3.xpose.msk.msra.mxu1 %vm259_vm11, %v1227_v63 }
 0xbc6   :  { %2352 = vmatprep.subr.msk.mxu1 %vm259_vm11, %v1225_v1 }
 0xbc9   :  { %2353 = vmatpush3.xpose.msk.msra.mxu1 %vm259_vm11, %v1225_v1 }
 0xbca   :  { %2354 = vmatprep.subr.msk.mxu1 %vm259_vm11, %v1223_v19 }
 0xbcd   :  { %2355 = vmatpush3.xpose.msk.msra.mxu1 %vm259_vm11, %v1223_v19  ;;  %v1094_v19 = vld [vmem:[#allocation2 + $0x128] sm:$0xff] }
 0xbce   :  { %2356 = vmatprep.subr.msk.mxu1 %vm259_vm11, %v1221_v20 }
 0xbd1   :  { %2357 = vmatpush3.xpose.msk.msra.mxu1 %vm259_vm11, %v1221_v20  ;;  %v1092_v20 = vld [vmem:[#allocation2 + $0x118] sm:$0xff] }
 0xbd2   :  { %2399 = vmatprep.subr.mxu1 %v1090_v62 }
 0xbd4   :  { %2359 = vmatmul.mubr.msk.f32.vlgmr.msra.gmra.mxu1 %vm259_vm11, %v3002_v8 }
 0xbd5   :  { %2400 = vmatpush3.msra.mxu1 %v1090_v62 }
 0xbd6   :  { %2401 = vmatprep.subr.mxu1 %v1089_v0 }
 0xbd7   :  { %2402 = vmatpush3.msra.mxu1 %v1089_v0 }
 0xbd8   :  { %2403 = vmatprep.subr.mxu1 %v1088_v29 }
 0xbd9   :  { %2404 = vmatpush3.msra.mxu1 %v1088_v29 }
 0xbda   :  { %2405 = vmatprep.subr.mxu1 %v1087_v31 }
 0xbdb   :  { %2406 = vmatpush3.msra.mxu1 %v1087_v31 }
 0xc94   :  { %v2360_v55 = vpop.f32.mrf.mxu1 }
 0xc95   :  { %v1330_v46 = vadd.f32 %v2360_v55, %v2765_v49  ;;  %v1211_v49 = vmul.f32 %v3002_v8, %v2890_v30  ;;  %v1205_v30 = vmul.f32 %v3002_v8, %v2920_v6  ;;  %v1091_v55 = vld [vmem:[#allocation2 + $0x110] sm:$0xff] }
 0xc96   :  { %v1324_v21 = vpop.f32.mrf.mxu1 }
 0xc97   :  { %v1325_v13 = vadd.f32 %v1324_v21, %v2767_v54  ;;  %v1336_v45 = vsel %vm534_vm2, %v1330_v46, -inf  ;;  %v1209_v54 = vmul.f32 %v3002_v8, %v2900_v34  ;;  %v1101_v21 = vld [vmem:[#allocation2 + $0x160] sm:$0xff] }
 0xc98   :  { %1337 = vmax.xlane.f32.xlu1 %v1336_v45  ;;  %v1099_v45 = vld [vmem:[#allocation2 + $0x150] sm:$0xff] }
 0xc99   :  { %v1333_v52 = vsel %vm534_vm2, %v1325_v13, -inf }
 0xc9a   :  { %1334 = vmax.xlane.f32.xlu0 %v1333_v52 }
 0xca9   :  { %1450 = vrot.lane.b32.xlu1 %v1210_v14, %s2572_s27 }
 0xcad   :  { %1446 = vrot.lane.b32.xlu1 %v1208_v16, %s2572_s27 }
 0xcb0   :  { %1452 = vrot.lane.b32.xlu0 %v1211_v49, %s2572_s27 }
 0xcb1   :  { %1442 = vrot.lane.b32.xlu1 %v1206_v22, %s2572_s27 }
 0xcb4   :  { %1448 = vrot.lane.b32.xlu0 %v1209_v54, %s2572_s27 }
 0xcb5   :  { %1438 = vrot.lane.b32.xlu1 %v1204_v27, %s2572_s27 }
 0xcb8   :  { %1444 = vrot.lane.b32.xlu0 %v1207_v32, %s2572_s27  ;;  %v2076_v32 = vld [vmem:[#allocation5 + $0x1b] ss:$0 sm:$0xff] }
 0xcbc   :  { %1440 = vrot.lane.b32.xlu0 %v1205_v30, %s2572_s27 }
 0xd21   :  { %v1338_v36 = vpop.xlane.xlu1 %1337 }
 0xd22   :  { %v1340_v3 = vsub.f32 %v1330_v46, %v1338_v36  ;;  %v1102_v46 = vld [vmem:[#allocation2 + $0x168] sm:$0xff] }
 0xd23   :  { %v1335_v17 = vpop.xlane.xlu0 %1334  ;;  %2421 = vmatprep.subr.mxu1 %v1102_v46  ;;  %v2077_v36 = vld [vmem:[#allocation5 + $0x1c] ss:$0 sm:$0xff] }
 0xd24   :  { %v1339_v34 = vsub.f32 %v1325_v13, %v1335_v17  ;;  %v1343_v41 = vmul.f32 1.442695, %v1340_v3  ;;  %v1100_v13 = vld [vmem:[#allocation2 + $0x158] sm:$0xff] }
 0xd25   :  { %v1451_v43 = vpop.permute.xlu1 %1450 }
 0xd26   :  { %v1341_v40 = vmul.f32 1.442695, %v1339_v34 }
 0xd27   :  { %v1453_v42 = vpop.permute.xlu0 %1452 }
 0xd28   :  { %2480 = vpow2.f32 %v1341_v40  ;;  %2380 = vmatprep.subr.mxu0 %v1453_v42 }
 0xd29   :  { %2482 = vpow2.f32 %v1343_v41  ;;  %v1447_v6 = vpop.permute.xlu1 %1446 }
 0xd2b   :  { %v1449_v51 = vpop.permute.xlu0 %1448 }
 0xd2d   :  { %v1443_v57 = vpop.permute.xlu1 %1442 }
 0xd2f   :  { %v1445_v56 = vpop.permute.xlu0 %1444 }
 0xd31   :  { %v1439_v61 = vpop.permute.xlu1 %1438 }
 0xd33   :  { %v1441_v59 = vpop.permute.xlu0 %1440 }
 0xd35   :  { %v2481_v44 = vpop.eup %2480 }
 0xd36   :  { %v2483_v38 = vpop.eup %2482  ;;  %2377 = vmatprep.mubr.msk.f32.mxu0 %vm534_vm2, %v2481_v44 }
 0xd37   :  { %2378 = vmatmul.mubr.msk.f32.vlgmr.msra.gmra.mxu0 %vm534_vm2, %v2483_v38 }
 0xd38   :  { %2381 = vmatpush3.msra.mxu0 %v1453_v42 }
 0xd39   :  { %2382 = vmatprep.subr.mxu0 %v1451_v43 }
 0xd3a   :  { %2383 = vmatpush3.msra.mxu0 %v1451_v43  ;;  %v1098_v43 = vld [vmem:[#allocation2 + $0x148] sm:$0xff] }
 0xd3b   :  { %2384 = vmatprep.subr.mxu0 %v1449_v51 }
 0xd3c   :  { %2385 = vmatpush3.msra.mxu0 %v1449_v51  ;;  %v1095_v51 = vld [vmem:[#allocation2 + $0x130] sm:$0xff] }
 0xd3d   :  { %2386 = vmatprep.subr.mxu0 %v1447_v6 }
 0xd3e   :  { %2387 = vmatpush3.msra.mxu0 %v1447_v6  ;;  %v2078_v6 = vld [vmem:[#allocation5 + $0x1d] ss:$0 sm:$0xff] }
 0xd3f   :  { %2388 = vmatprep.subr.mxu0 %v1445_v56 }
 0xd40   :  { %2389 = vmatpush3.msra.mxu0 %v1445_v56 }
 0xd41   :  { %2390 = vmatprep.subr.mxu0 %v1443_v57 }
 0xd42   :  { %2391 = vmatpush3.msra.mxu0 %v1443_v57 }
 0xd43   :  { %2392 = vmatprep.subr.mxu0 %v1441_v59 }
 0xd44   :  { %2393 = vmatpush3.msra.mxu0 %v1441_v59 }
 0xd45   :  { %2394 = vmatprep.subr.mxu0 %v1439_v61 }
 0xd46   :  { %2395 = vmatpush3.msra.mxu0 %v1439_v61 }
 0xd47   :  { %2410 = vmatprep.subr.mxu0 %v1094_v19 }
 0xdf7   :  { %v2379_v15 = vpop.f32.mrf.mxu0 }
 0xdf8   :  { %2484 = vrcp.f32 %v2379_v15  ;;  %v2081_v15 = vld [vmem:[#allocation5 + $0x1e] ss:$0 sm:$0xff] }
 0xdf9   :  { %v1417_v23 = vpop.f32.mrf.mxu0 }
 0xdfa   :  { %2486 = vrcp.f32 %v1417_v23 }
 0xe05   :  { %v2485_v24 = vpop.eup %2484 }
 0xe06   :  { %v1429_v28 = vmul.f32 %v2485_v24, %v2483_v38  ;;  %v1096_v38 = vld [vmem:[#allocation2 + $0x138] sm:$0xff] }
 0xe07   :  { %v2487_v25 = vpop.eup %2486 }
 0xe08   :  { %v1427_v26 = vmul.f32 %v2487_v25, %v2481_v44  ;;  %v1097_v44 = vld [vmem:[#allocation2 + $0x140] sm:$0xff] }
 0xe0a   :  { %2396 = vmatprep.mubr.msk.f32.mxu0 %vm534_vm2, %v1427_v26 }
 0xe0b   :  { %2397 = vmatmul.mubr.msk.f32.vlgmr.msra.gmra.mxu0 %vm534_vm2, %v1429_v28 }
 0xe0c   :  { %2411 = vmatpush3.msra.mxu0 %v1094_v19 }
 0xecb   :  { %v2398_v33 = vpop.f32.mrf.mxu0 }
 0xecd   :  { %v1534_v39 = vpop.f32.mrf.mxu0 }
 0xece   :  { %2407 = vmatprep.mubr.msk.f32.mxu1 %vm259_vm11, %v1534_v39 }
 0xecf   :  { %2408 = vmatmul.mubr.msk.f32.vlgmr.msra.gmra.mxu1 %vm259_vm11, %v2398_v33 }
 0xed0   :  { %2422 = vmatpush3.msra.mxu1 %v1102_v46 }
 0xed1   :  { %2423 = vmatprep.subr.mxu1 %v1101_v21 }
 0xed2   :  { %2424 = vmatpush3.msra.mxu1 %v1101_v21 }
 0xed3   :  { %2425 = vmatprep.subr.mxu1 %v1100_v13 }
 0xed4   :  { %2426 = vmatpush3.msra.mxu1 %v1100_v13  ;;  %v2085_v13 = vld [vmem:[#allocation5 + $0x20] ss:$0 sm:$0xff] }
 0xed5   :  { %2427 = vmatprep.subr.mxu1 %v1099_v45 }
 0xed6   :  { %2428 = vmatpush3.msra.mxu1 %v1099_v45 }
 0xed7   :  { %2429 = vmatprep.subr.mxu1 %v1098_v43 }
 0xed8   :  { %2430 = vmatpush3.msra.mxu1 %v1098_v43 }
 0xed9   :  { %2431 = vmatprep.subr.mxu1 %v1097_v44 }
 0xeda   :  { %2432 = vmatpush3.msra.mxu1 %v1097_v44 }
 0xedb   :  { %2433 = vmatprep.subr.mxu1 %v1096_v38 }
 0xedc   :  { %2434 = vmatpush3.msra.mxu1 %v1096_v38 }
 0xedd   :  { %2435 = vmatprep.subr.mxu1 %v1095_v51 }
 0xede   :  { %2436 = vmatpush3.msra.mxu1 %v1095_v51 }
 0xf8f   :  { %v2409_v8 = vpop.f32.mrf.mxu1 }
 0xf90   :  { %v1625_v9 = vadd.f32 %v2409_v8, %v2073_v5 }
 0xf91   :  { %v1619_v10 = vpop.f32.mrf.mxu1 }
 0xf92   :  { %v1620_v11 = vadd.f32 %v2073_v5, %v1619_v10  ;;  %v1629_v12 = vadd.f32 %v1625_v9, %v2996_v37 }
 0xf94   :  { %v1633_v2 = vsel %vm259_vm11, %v1629_v12, 0.0  ;;  %v1628_v4 = vadd.f32 %v1620_v11, %v2994_v35  ;;  %v1093_v35 = vld [vmem:[#allocation2 + $0x120] sm:$0xff] }
 0xf95   :  { %1634 = vadd.xlane.f32.xlu1 %v1633_v2  ;;  %2412 = vmatprep.subr.mxu0 %v1093_v35 }
 0xf96   :  { %v1630_v47 = vsel %vm259_vm11, %v1628_v4, 0.0  ;;  %2413 = vmatpush3.msra.mxu0 %v1093_v35  ;;  %v2084_v35 = vld [vmem:[#allocation5 + $0x1f] ss:$0 sm:$0xff] }
 0xf97   :  { %1631 = vadd.xlane.f32.xlu0 %v1630_v47  ;;  %2414 = vmatprep.subr.mxu0 %v1092_v20 }
 0xf98   :  { %2415 = vmatpush3.msra.mxu0 %v1092_v20 }
 0xf99   :  { %2416 = vmatprep.subr.mxu0 %v1091_v55 }
 0xf9a   :  { %2417 = vmatpush3.msra.mxu0 %v1091_v55 }
0x101e   :  { %v1635_v7 = vpop.xlane.xlu1 %1634 }
0x101f   :  { %v1637_v48 = vmul.f32 0.03125, %v1635_v7  ;;  %v1883_v7 = vld [vmem:[#allocation2 + $0x28] sm:$0xff] }
0x1020   :  { %v1632_v50 = vpop.xlane.xlu0 %1631  ;;  %2440 = vmatprep.subr.mxu0 %v1883_v7 }
0x1021   :  { %v1636_v58 = vmul.f32 0.03125, %v1632_v50  ;;  %v1639_v53 = vsub.f32 %v1629_v12, %v1637_v48  ;;  %v1882_v48 = vld [vmem:[#allocation2 + $0x20] sm:$0xff]  ;;  %v1881_v50 = vld [vmem:[#allocation2 + $0x18] sm:$0xff] }
0x1023   :  { %v1638_v18 = vsub.f32 %v1628_v4, %v1636_v58  ;;  %v1641_v1 = vmul.f32 %v1639_v53, %v1639_v53  ;;  %v1880_v58 = vld [vmem:[#allocation2 + $0x10] sm:$0xff] }
0x1025   :  { %v1640_v60 = vmul.f32 %v1638_v18, %v1638_v18  ;;  %v1645_v37 = vsel %vm259_vm11, %v1641_v1, 0.0 }
0x1027   :  { %v1642_v63 = vsel %vm259_vm11, %v1640_v60, 0.0 }
0x1028   :  { %1643 = vadd.xlane.f32.xlu0 %v1642_v63 }
0x102c   :  { %1646 = vadd.xlane.f32.xlu0 %v1645_v37 }
0x10b1   :  { %v1644_v52 = vpop.xlane.xlu0 %1643 }
0x10b2   :  { %v1648_v14 = vmul.f32 0.03125, %v1644_v52 }
0x10b4   :  { %v1650_v16 = vadd.f32 1e-05, %v1648_v14 }
0x10b5   :  { %v1647_v49 = vpop.xlane.xlu0 %1646 }
0x10b6   :  { %2488 = vrsqrt.f32 %v1650_v16  ;;  %v1649_v22 = vmul.f32 0.03125, %v1647_v49  ;;  %v2086_v16 = vld [vmem:[#allocation5 + $0x10] ss:$0 sm:$0xff] }
0x10b8   :  { %v1651_v54 = vadd.f32 1e-05, %v1649_v22 }
0x10ba   :  { %2490 = vrsqrt.f32 %v1651_v54 }
0x10c3   :  { %v2489_v27 = vpop.eup %2488 }
0x10c4   :  { %v1654_v30 = vmul.f32 %v2489_v27, %v1638_v18 }
0x10c6   :  { %v1660_v3 = vmul.f32 %v2076_v32, %v1654_v30 }
0x10c7   :  { %v2491_v17 = vpop.eup %2490 }
0x10c8   :  { %v1655_v34 = vmul.f32 %v2491_v17, %v1639_v53  ;;  %v1666_v41 = vadd.f32 %v2077_v36, %v1660_v3 }
0x10ca   :  { %v1661_v40 = vmul.f32 %v2076_v32, %v1655_v34  ;;  %2418 = vmatprep.mubr.msk.f32.mxu0 %vm259_vm11, %v1666_v41 }
0x10cc   :  { %v1667_v42 = vadd.f32 %v2077_v36, %v1661_v40 }
0x10ce   :  { %2419 = vmatmul.mubr.msk.f32.vlgmr.msra.gmra.mxu0 %vm259_vm11, %v1667_v42 }
0x10cf   :  { %2441 = vmatpush3.msra.mxu0 %v1883_v7 }
0x10d0   :  { %2442 = vmatprep.subr.mxu0 %v1882_v48 }
0x10d1   :  { %2443 = vmatpush3.msra.mxu0 %v1882_v48 }
0x10d2   :  { %2444 = vmatprep.subr.mxu0 %v1881_v50 }
0x10d3   :  { %2445 = vmatpush3.msra.mxu0 %v1881_v50 }
0x10d4   :  { %2446 = vmatprep.subr.mxu0 %v1880_v58 }
0x10d5   :  { %2447 = vmatpush3.msra.mxu0 %v1880_v58 }
0x118e   :  { %v2420_v56 = vpop.f32.mrf.mxu0 }
0x118f   :  { %v1750_v57 = vadd.f32 %v2420_v56, %v2078_v6 }
0x1190   :  { %v1744_v59 = vpop.f32.mrf.mxu0 }
0x1191   :  { %v1745_v61 = vadd.f32 %v2078_v6, %v1744_v59  ;;  %v1754_v0 = vmax.f32 %v1750_v57, 0.0 }
0x1193   :  { %v1753_v62 = vmax.f32 %v1745_v61, 0.0 }
0x1195   :  { %2437 = vmatprep.mubr.msk.f32.mxu1 %vm534_vm2, %v1753_v62 }
0x1196   :  { %2438 = vmatmul.mubr.msk.f32.vlgmr.msra.gmra.mxu1 %vm534_vm2, %v1754_v0 }
0x1256   :  { %v2439_v23 = vpop.f32.mrf.mxu1 }
0x1257   :  { %v1837_v24 = vadd.f32 %v2439_v23, %v2081_v15 }
0x1258   :  { %v1831_v25 = vpop.f32.mrf.mxu1 }
0x1259   :  { %v1832_v26 = vadd.f32 %v2081_v15, %v1831_v25  ;;  %v1841_v28 = vadd.f32 %v1837_v24, %v1667_v42 }
0x125b   :  { %v1845_v29 = vsel %vm259_vm11, %v1841_v28, 0.0  ;;  %v1840_v31 = vadd.f32 %v1832_v26, %v1666_v41 }
0x125c   :  { %1846 = vadd.xlane.f32.xlu0 %v1845_v29 }
0x125d   :  { %v1842_v33 = vsel %vm259_vm11, %v1840_v31, 0.0 }
0x125e   :  { %1843 = vadd.xlane.f32.xlu1 %v1842_v33 }
0x12e5   :  { %v1847_v39 = vpop.xlane.xlu0 %1846 }
0x12e6   :  { %v1849_v5 = vmul.f32 0.03125, %v1847_v39 }
0x12e7   :  { %v1844_v8 = vpop.xlane.xlu1 %1843 }
0x12e8   :  { %v1851_v9 = vsub.f32 %v1841_v28, %v1849_v5  ;;  %v1848_v10 = vmul.f32 0.03125, %v1844_v8 }
0x12ea   :  { %v1850_v11 = vsub.f32 %v1840_v31, %v1848_v10  ;;  %v1853_v12 = vmul.f32 %v1851_v9, %v1851_v9 }
0x12ec   :  { %v1857_v2 = vsel %vm259_vm11, %v1853_v12, 0.0  ;;  %v1852_v4 = vmul.f32 %v1850_v11, %v1850_v11 }
0x12ed   :  { %1858 = vadd.xlane.f32.xlu0 %v1857_v2 }
0x12ee   :  { %v1854_v47 = vsel %vm259_vm11, %v1852_v4, 0.0 }
0x12ef   :  { %1855 = vadd.xlane.f32.xlu1 %v1854_v47 }
0x1376   :  { %v1859_v53 = vpop.xlane.xlu0 %1858 }
0x1377   :  { %v1861_v18 = vmul.f32 0.03125, %v1859_v53 }
0x1378   :  { %v1856_v60 = vpop.xlane.xlu1 %1855 }
0x1379   :  { %v1863_v63 = vadd.f32 1e-05, %v1861_v18  ;;  %v1860_v1 = vmul.f32 0.03125, %v1856_v60 }
0x137b   :  { %2492 = vrsqrt.f32 %v1863_v63  ;;  %v1862_v37 = vadd.f32 1e-05, %v1860_v1 }
0x137d   :  { %2494 = vrsqrt.f32 %v1862_v37 }
0x1388   :  { %v2493_v19 = vpop.eup %2492 }
0x1389   :  { %v1867_v20 = vmul.f32 %v2493_v19, %v1851_v9 }
0x138a   :  { %v2495_v55 = vpop.eup %2494 }
0x138b   :  { %v1866_v46 = vmul.f32 %v2495_v55, %v1850_v11  ;;  %v1873_v21 = vmul.f32 %v2084_v35, %v1867_v20 }
0x138d   :  { %v1872_v45 = vmul.f32 %v2084_v35, %v1866_v46  ;;  %v1879_v14 = vadd.f32 %v2085_v13, %v1873_v21 }
0x138f   :  { %v1878_v52 = vadd.f32 %v2085_v13, %v1872_v45 }
0x1391   :  { %2448 = vmatprep.mubr.msk.f32.mxu0 %vm259_vm11, %v1878_v52 }
0x1392   :  { %2449 = vmatmul.mubr.msk.f32.vlgmr.msra.gmra.mxu0 %vm259_vm11, %v1879_v14 }
0x1452   :  { %v2450_v49 = vpop.f32.mrf.mxu0 }
0x1453   :  { %v1967_v22 = vadd.f32 %v2450_v49, %v2086_v16 }
0x1454   :  { %v1961_v54 = vpop.f32.mrf.mxu0 }
0x1455   :  { %1971 = vst [vmem:[#allocation7 + $0x8] sm:$0xff] %v1967_v22  ;;  %v1962_v27 = vadd.f32 %v2086_v16, %v1961_v54 }
0x1457   :  { %1970 = vst [vmem:[#allocation7] sm:$0xff] %v1962_v27 }
0x1458   :  { %2547 = shalt.err (!%p2544_p0)
}
0x1459   :  { %1983 = dma.vmem_to_hbm [thread:$0]  %s1978_s29, 256, %s3098_s3, [#allocation4], %s2563_s15, %s2563_s15, %s2564_s16  }
0x145a   :  { %2560 = dma.done.wait [#allocation4], 256  }
0x145b   :  { %2561 = vsyncadd [#allocation4], 4294967040 }
0x145c   :  { %1987 = vsyncpa [#allocation3], 1 }
0x145d   :  { %1988 = vsyncpa [#allocation6], 1 }
0x145e   :  { %1989 = vsyncpa [#allocation4], 1 }

</bundles_post_ra>
